<compile_context>
chip_gen: v7x
topology: tpu7x:2x2x1
jax: 0.10.0
libtpu: 0.0.40
codegen_flags: <defaults>
</compile_context>

<pallas_src>
import functools

import jax
import jax.numpy as jnp
from jax.experimental import pallas as pl
from jax.experimental.pallas import tpu as pltpu


# 48 MiB: generous on v5e/v6e (128 MiB physical) while leaving headroom on v7x (64 MiB/TC).
VMEM_LIMIT_BYTES = 48 * 1024 * 1024


# ---------------------------------------------------------------------------
# Fused (LayerNorm) + GEMM + bias (+GELU) (+residual) kernel
# ---------------------------------------------------------------------------

def _linear_kernel(*refs, activation, has_ln, has_res, k_true, eps):
    # refs = (x, w, b, [ln_g, ln_b], [residual], out, acc_scratch, [xn_scratch])
    x_ref, w_ref, b_ref = refs[0], refs[1], refs[2]
    idx = 3
    if has_ln:
        g_ref, bln_ref = refs[idx], refs[idx + 1]
        idx += 2
    if has_res:
        r_ref = refs[idx]
        idx += 1
    o_ref, acc_ref = refs[idx], refs[idx + 1]
    xn_ref = refs[idx + 2] if has_ln else None

    j = pl.program_id(1)
    k = pl.program_id(2)

    @pl.when(k == 0)
    def _init():
        acc_ref[...] = jnp.zeros_like(acc_ref)

    if has_ln:
        # LayerNorm is hoisted: computed once per M tile (j == 0; tk == K when has_ln)
        # into a bf16 VMEM scratch and reused for every N tile.  The j axis is marked
        # "arbitrary" so megacore cannot give a core a j > 0 step without its j == 0.
        @pl.when(j == 0)
        def _ln():
            xf = x_ref[...].astype(jnp.float32)
            inv_k = 1.0 / float(k_true)
            mu = jnp.sum(xf, axis=-1, keepdims=True) * inv_k
            var = jnp.maximum(
                jnp.sum(xf * xf, axis=-1, keepdims=True) * inv_k - mu * mu, 0.0)
            xhat = (xf - mu) * jax.lax.rsqrt(var + eps)
            xn_ref[...] = (xhat * g_ref[...] + bln_ref[...]).astype(jnp.bfloat16)

        xin = xn_ref[...]
    else:
        xin = x_ref[...].astype(jnp.bfloat16)

    acc_ref[...] += jnp.dot(xin, w_ref[...].astype(jnp.bfloat16),
                            preferred_element_type=jnp.float32)

    @pl.when(k == pl.num_programs(2) - 1)
    def _finalize():
        y = acc_ref[...] + b_ref[...].astype(jnp.float32)
        if activation == "gelu":
            # TODO(synk): timm ViT uses exact erf-GELU; tanh approximation is used
            # here because erf has no guaranteed Mosaic lowering.
            c = 0.7978845608028654  # sqrt(2/pi)
            y = 0.5 * y * (1.0 + jnp.tanh(c * (y + 0.044715 * y * y * y)))
        if has_res:
            y = y + r_ref[...].astype(jnp.float32)   # residual add stays in f32
        o_ref[...] = y.astype(o_ref.dtype)


def fused_linear(x, w, b, *, ln=None, residual=None, activation=None,
                 out_dtype=None, tm=512, tn=768, tk=1024):
    """o = [residual +] act( LN(x) @ w + b ).

    x: [M, K]; w: [K, N] (bf16); b: [N]; ln = (gamma, beta) each [K]; residual: [M, N].
    """
    M, K = x.shape
    K2, N = w.shape
    assert K == K2
    out_dtype = out_dtype if out_dtype is not None else x.dtype
    has_ln = ln is not None
    has_res = residual is not None

    # Lane-dense output padding (e.g. a 1000-class head -> 1024); sliced off afterwards.
    n_out = N
    if N > 128 and N % 128 != 0:
        n_padded = ((N + 127) // 128) * 128
        w = jnp.pad(w, ((0, 0), (0, n_padded - N)))
        b = jnp.pad(b, ((0, n_padded - N),))
        if has_res:
            residual = jnp.pad(residual, ((0, 0), (0, n_padded - N)))
        N = n_padded

    # --- tile selection (no data padding on M; partial edge M-blocks are masked) ---
    tm = M if M <= tm else tm
    if N % 128 != 0 or N <= tn:
        tn = N                                   # single full-extent N block
    else:
        tn = max(d for d in range(128, tn + 1, 128) if N % d == 0)
    if has_ln or K % 128 != 0 or K <= tk:
        tk = K                                   # LN needs the full feature row
    else:
        tk = max(d for d in range(128, tk + 1, 128) if K % d == 0)

    grid = (pl.cdiv(M, tm), N // tn, K // tk)

    in_specs = [
        pl.BlockSpec((tm, tk), lambda i, j, k: (i, k)),
        pl.BlockSpec((tk, tn), lambda i, j, k: (k, j)),
        pl.BlockSpec((1, tn), lambda i, j, k: (0, j)),
    ]
    args = [x, w, b.reshape(1, N)]
    if has_ln:
        g, beta = ln
        in_specs += [pl.BlockSpec((1, tk), lambda i, j, k: (0, k)),
                     pl.BlockSpec((1, tk), lambda i, j, k: (0, k))]
        args += [g.astype(jnp.float32).reshape(1, K),
                 beta.astype(jnp.float32).reshape(1, K)]
    if has_res:
        # Residual index map is constant across the inner k axis, so Pallas's block
        # revisiting elides re-fetch; it is only consumed in the k==last epilogue.
        in_specs.append(pl.BlockSpec((tm, tn), lambda i, j, k: (i, j)))
        args.append(residual)

    scratch = [pltpu.VMEM((tm, tn), jnp.float32)]
    if has_ln:
        scratch.append(pltpu.VMEM((tm, tk), jnp.bfloat16))   # hoisted LN(x) tile

    out_bytes = M * N * jnp.dtype(out_dtype).itemsize
    cost = pl.CostEstimate(
        flops=2 * M * N * K,
        transcendentals=M * N if activation == "gelu" else 0,
        bytes_accessed=int(x.size * x.dtype.itemsize + w.size * w.dtype.itemsize
                           + out_bytes + (out_bytes if has_res else 0)),
    )

    out = pl.pallas_call(
        functools.partial(_linear_kernel, activation=activation, has_ln=has_ln,
                          has_res=has_res, k_true=K, eps=1e-6),
        out_shape=jax.ShapeDtypeStruct((M, N), out_dtype),
        grid=grid,
        in_specs=in_specs,
        out_specs=pl.BlockSpec((tm, tn), lambda i, j, k: (i, j)),
        scratch_shapes=scratch,
        compiler_params=pltpu.CompilerParams(
            dimension_semantics=("parallel",
                                 "arbitrary" if has_ln else "parallel",
                                 "arbitrary"),
            vmem_limit_bytes=VMEM_LIMIT_BYTES),
        cost_estimate=cost,
    )(*args)

    if N != n_out:
        out = out[:, :n_out]
    return out


# ---------------------------------------------------------------------------
# Multi-head attention core: one (image, head-group) per grid step
# ---------------------------------------------------------------------------

def _attn_groups(heads, head_dim):
    """Head-pair grouping when each group's output width is 128-lane aligned;
    otherwise a single group covering all heads (small smoke-test shapes)."""
    if heads % 2 == 0 and (2 * head_dim) % 128 == 0:
        return heads // 2
    return 1


def _attn_kernel(qkv_ref, o_ref, *, heads_per_group, head_dim):
    gw = heads_per_group * head_dim
    qkv = qkv_ref[0]                                   # [S, 3*gw] bf16: q|k|v of this group
    outs = []
    for h in range(heads_per_group):                   # static unroll (2 at ViT-B scale)
        q = qkv[:, h * head_dim:(h + 1) * head_dim]    # softmax scale pre-folded into qkv_w
        k = qkv[:, gw + h * head_dim:gw + (h + 1) * head_dim]
        v = qkv[:, 2 * gw + h * head_dim:2 * gw + (h + 1) * head_dim]
        s = jax.lax.dot_general(q, k, (((1,), (1,)), ((), ())),
                                preferred_element_type=jnp.float32)     # [S, S]
        m = jnp.max(s, axis=-1, keepdims=True)
        p = jnp.exp(s - m)
        p = p * pl.reciprocal(jnp.sum(p, axis=-1, keepdims=True), approx=True)
        outs.append(jnp.dot(p.astype(jnp.bfloat16), v,
                            preferred_element_type=jnp.float32))        # [S, Dh]
    o = outs[0] if heads_per_group == 1 else jnp.concatenate(outs, axis=-1)
    o_ref[0] = o.astype(o_ref.dtype)                   # single lane-dense store


def attention(qkv, *, heads, head_dim):
    """qkv: [B, S, 3D] (bf16, head-group-major columns) -> [B, S, D] (bf16)."""
    B, S, threeD = qkv.shape
    D = heads * head_dim
    assert threeD == 3 * D
    n_groups = _attn_groups(heads, head_dim)
    hp = heads // n_groups
    gw = hp * head_dim
    cost = pl.CostEstimate(flops=4 * B * heads * S * S * head_dim,
                           transcendentals=B * heads * S * S,
                           bytes_accessed=int(qkv.size * qkv.dtype.itemsize
                                              + B * S * D * 2))
    # TODO(synk): for S=197 at real scale, pad S to a 128-multiple with a masked
    # softmax for fully tiled score blocks; full-extent S blocks are used here.
    return pl.pallas_call(
        functools.partial(_attn_kernel, heads_per_group=hp, head_dim=head_dim),
        out_shape=jax.ShapeDtypeStruct((B, S, D), jnp.bfloat16),
        grid=(B, n_groups),
        in_specs=[pl.BlockSpec((1, S, 3 * gw), lambda b, g: (b, 0, g))],
        out_specs=pl.BlockSpec((1, S, gw), lambda b, g: (b, 0, g)),
        compiler_params=pltpu.CompilerParams(
            dimension_semantics=("parallel", "parallel")),
        cost_estimate=cost,
    )(qkv)


# ---------------------------------------------------------------------------
# ViT model (parameter init + prep + forward; plain-JAX glue around Pallas kernels)
# ---------------------------------------------------------------------------

def init_params(key, *, n_channels, n_classes, img_size, patch, dim, depth,
                heads, mlp_dim):
    keys = jax.random.split(key, 8 + 6 * depth)
    ki = iter(keys)

    def nrm(shape, std=0.02, dtype=jnp.bfloat16):
        return (std * jax.random.normal(next(ki), shape, dtype=jnp.float32)).astype(dtype)

    n_patches = (img_size // patch) ** 2
    p = {
        # Conv2d(patch, patch, stride=patch) weight, pre-flattened to [C*P*P, D]
        # in (c, ph, pw) order, matching the patch flattening in vit_forward.
        "patch_w": nrm((n_channels * patch * patch, dim)),
        "patch_b": jnp.zeros((dim,), jnp.float32),
        "cls": nrm((1, 1, dim), dtype=jnp.float32),
        "pos": nrm((1, n_patches + 1, dim), dtype=jnp.float32),
        "ln_g": jnp.ones((dim,), jnp.float32),
        "ln_b": jnp.zeros((dim,), jnp.float32),
        "head_w": nrm((dim, n_classes)),
        "head_b": jnp.zeros((n_classes,), jnp.float32),
        "blocks": [],
    }
    for _ in range(depth):
        p["blocks"].append({
            "ln1_g": jnp.ones((dim,), jnp.float32),
            "ln1_b": jnp.zeros((dim,), jnp.float32),
            "qkv_w": nrm((dim, 3 * dim)),
            "qkv_b": jnp.zeros((3 * dim,), jnp.float32),
            "proj_w": nrm((dim, dim)),
            "proj_b": jnp.zeros((dim,), jnp.float32),
            "ln2_g": jnp.ones((dim,), jnp.float32),
            "ln2_b": jnp.zeros((dim,), jnp.float32),
            "fc1_w": nrm((dim, mlp_dim)),
            "fc1_b": jnp.zeros((mlp_dim,), jnp.float32),
            "fc2_w": nrm((mlp_dim, dim)),
            "fc2_b": jnp.zeros((dim,), jnp.float32),
        })
    return p


def _qkv_col_perm(dim, heads, n_groups):
    """Column permutation taking [q all heads | k all | v all] to per-group [q|k|v]."""
    head_dim = dim // heads
    hp = heads // n_groups
    perm = []
    for g in range(n_groups):
        for which in range(3):
            for hh in range(hp):
                start = which * dim + (g * hp + hh) * head_dim
                perm.extend(range(start, start + head_dim))
    return jnp.asarray(perm, dtype=jnp.int32)


def prepare_params(params, *, heads):
    """One-time parameter prep (call once, outside jit): permute qkv columns into the
    head-group-major layout consumed by attention() and fold the softmax scale into
    the q third of qkv_w / qkv_b (removes the in-kernel q scaling)."""
    if not params["blocks"]:
        return params
    dim = params["blocks"][0]["qkv_w"].shape[0]
    head_dim = dim // heads
    scale = 1.0 / float(head_dim) ** 0.5
    n_groups = _attn_groups(heads, head_dim)
    perm = _qkv_col_perm(dim, heads, n_groups)
    col_scale = jnp.concatenate([jnp.full((dim,), scale, jnp.float32),
                                 jnp.ones((2 * dim,), jnp.float32)])
    out = dict(params)
    out["blocks"] = []
    for blk in params["blocks"]:
        b2 = dict(blk)
        w = (blk["qkv_w"].astype(jnp.float32) * col_scale[None, :]).astype(blk["qkv_w"].dtype)
        bb = blk["qkv_b"].astype(jnp.float32) * col_scale
        b2["qkv_w"] = w[:, perm]
        b2["qkv_b"] = bb[perm]
        out["blocks"].append(b2)
    return out


def vit_forward(params, x, *, patch, dim, heads):
    """x: NCHW [B, C, H, W] -> logits [B, n_classes] (f32). Expects prepare_params()'d params."""
    B, C, H, W = x.shape
    P = patch
    gh, gw_ = H // P, W // P
    N = gh * gw_
    assert dim % heads == 0
    head_dim = dim // heads

    # Patchify (glue): NCHW -> [B*N, C*P*P] in (c, ph, pw) order; bf16 halves x-side DMA.
    # TODO(synk): fold the NCHW patchify into the patch-embed GEMM's index_map instead
    # of materializing the transposed copy via XLA.
    patches = (x.reshape(B, C, gh, P, gw_, P)
                .transpose(0, 2, 4, 1, 3, 5)
                .reshape(B * N, C * P * P)).astype(jnp.bfloat16)
    tok = fused_linear(patches, params["patch_w"], params["patch_b"],
                       out_dtype=jnp.bfloat16).reshape(B, N, dim)

    # Prepend cls token, add positional embedding.  The residual stream is bf16 in
    # HBM; all accumulation and residual adds stay f32 inside the kernels.
    cls = jnp.broadcast_to(params["cls"], (B, 1, dim)).astype(jnp.bfloat16)
    xseq = (jnp.concatenate([cls, tok], axis=1).astype(jnp.float32)
            + params["pos"]).astype(jnp.bfloat16)                    # [B, S, D] bf16
    S = N + 1
    x2d = xseq.reshape(B * S, dim)

    for blk in params["blocks"]:
        # --- attention sub-block: x = x + proj(attn(norm1(x))) ---
        qkv = fused_linear(x2d, blk["qkv_w"], blk["qkv_b"],
                           ln=(blk["ln1_g"], blk["ln1_b"]),
                           out_dtype=jnp.bfloat16)                   # [B*S, 3D], grouped cols
        attn_out = attention(qkv.reshape(B, S, 3 * dim),
                             heads=heads, head_dim=head_dim)
        x2d = fused_linear(attn_out.reshape(B * S, dim),
                           blk["proj_w"], blk["proj_b"],
                           residual=x2d, out_dtype=jnp.bfloat16)     # residual fused

        # --- MLP sub-block: x = x + fc2(gelu(fc1(norm2(x)))) ---
        h1 = fused_linear(x2d, blk["fc1_w"], blk["fc1_b"],
                          ln=(blk["ln2_g"], blk["ln2_b"]),
                          activation="gelu", out_dtype=jnp.bfloat16)
        x2d = fused_linear(h1, blk["fc2_w"], blk["fc2_b"],
                           residual=x2d, out_dtype=jnp.bfloat16)     # residual fused

    # Final LayerNorm + classification head only on the B cls rows (fused LN+GEMM).
    cls_rows = x2d.reshape(B, S, dim)[:, 0, :]                       # [B, D] bf16
    logits = fused_linear(cls_rows, params["head_w"], params["head_b"],
                          ln=(params["ln_g"], params["ln_b"]),
                          out_dtype=jnp.float32)                     # [B, n_classes]
    return logits


# ---------------------------------------------------------------------------

if __name__ == "__main__":
    key = jax.random.PRNGKey(0)
    kp, kx = jax.random.split(key)

    # Small shapes consistent with the ViT forward pass.
    B, C, IMG = 2, 4, 16            # batch, in_chans, image size
    PATCH, DIM, DEPTH = 8, 32, 2    # patch size, embed dim, #blocks
    HEADS, MLP_DIM, N_CLASSES = 2, 128, 10

    params = init_params(kp, n_channels=C, n_classes=N_CLASSES, img_size=IMG,
                         patch=PATCH, dim=DIM, depth=DEPTH, heads=HEADS,
                         mlp_dim=MLP_DIM)
    params = prepare_params(params, heads=HEADS)   # one-time qkv permute + scale fold
    x = jax.random.normal(kx, (B, C, IMG, IMG), dtype=jnp.float32)

    fwd = jax.jit(functools.partial(vit_forward, patch=PATCH, dim=DIM, heads=HEADS))
    logits = fwd(params, x)
    logits = jax.block_until_ready(logits)
    assert logits.shape == (B, N_CLASSES) and logits.dtype == jnp.float32
    assert bool(jnp.all(jnp.isfinite(logits)))
    print("KERNEL_OK")
</pallas_src>

<mosaic_0001>
module attributes {stable_mosaic.version = 11 : i64} {
  func.func @_linear_kernel(%arg0: i32, %arg1: i32, %arg2: i32, %arg3: memref<8x256xbf16, #tpu.memory_space<vmem>>, %arg4: memref<256x32xbf16, #tpu.memory_space<vmem>>, %arg5: memref<1x32xf32, #tpu.memory_space<vmem>>, %arg6: memref<8x32xbf16, #tpu.memory_space<vmem>>, %arg7: memref<8x32xf32, #tpu.memory_space<vmem>>) attributes {dimension_semantics = [#tpu.dimension_semantics<parallel>, #tpu.dimension_semantics<parallel>, #tpu.dimension_semantics<arbitrary>], iteration_bounds = array<i64: 1, 1, 1>, scalar_prefetch = 0 : i64, scratch_operands = 1 : i64, tpu.core_type = #tpu.core_type<tc>, window_params = [{transform_indices = @transform_0, window_bounds = array<i64: 8, 256>}, {transform_indices = @transform_1, window_bounds = array<i64: 256, 32>}, {transform_indices = @transform_2, window_bounds = array<i64: 1, 32>}, {transform_indices = @transform_3, window_bounds = array<i64: 8, 32>}]} {
    %c0_i32 = arith.constant 0 : i32
    %0 = arith.cmpi eq, %arg2, %c0_i32 : i32
    %1 = arith.extui %0 : i1 to i32
    %c0_i32_0 = arith.constant 0 : i32
    %2 = arith.cmpi ne, %1, %c0_i32_0 : i32
    scf.if %2 {
      %cst_10 = arith.constant 0.000000e+00 : f32
      %12 = vector.broadcast %cst_10 : f32 to vector<8x32xf32>
      %c0_11 = arith.constant 0 : index
      %c0_12 = arith.constant 0 : index
      %13 = vector.load %arg7[%c0_11, %c0_12] : memref<8x32xf32, #tpu.memory_space<vmem>>, vector<8x32xf32>
      tpu.vector_store %arg7[%c0_11, %c0_12], %12 {strides = array<i32>} : memref<8x32xf32, #tpu.memory_space<vmem>>, vector<8x32xf32>,
    } else {
    }
    %c0 = arith.constant 0 : index
    %c0_1 = arith.constant 0 : index
    %3 = vector.load %arg3[%c0, %c0_1] : memref<8x256xbf16, #tpu.memory_space<vmem>>, vector<8x256xbf16>
    %c0_2 = arith.constant 0 : index
    %c0_3 = arith.constant 0 : index
    %4 = vector.load %arg7[%c0_2, %c0_3] : memref<8x32xf32, #tpu.memory_space<vmem>>, vector<8x32xf32>
    %c0_4 = arith.constant 0 : index
    %c0_5 = arith.constant 0 : index
    %5 = vector.load %arg4[%c0_4, %c0_5] : memref<256x32xbf16, #tpu.memory_space<vmem>>, vector<256x32xbf16>
    %cst = arith.constant dense<0.000000e+00> : vector<8x32xf32>
    %6 = tpu.matmul %3, %5, %cst {dimension_numbers = #tpu.dot_dimension_numbers<[1], [0], [0], [1], [0, 0, 1, 1], [], []>} : vector<8x256xbf16>, vector<256x32xbf16>, vector<8x32xf32> -> vector<8x32xf32>
    %7 = arith.addf %4, %6 : vector<8x32xf32>
    %c0_6 = arith.constant 0 : index
    %c0_7 = arith.constant 0 : index
    %8 = vector.load %arg7[%c0_6, %c0_7] : memref<8x32xf32, #tpu.memory_space<vmem>>, vector<8x32xf32>
    tpu.vector_store %arg7[%c0_6, %c0_7], %7 {strides = array<i32>} : memref<8x32xf32, #tpu.memory_space<vmem>>, vector<8x32xf32>,
    %c0_i32_8 = arith.constant 0 : i32
    %9 = arith.cmpi eq, %arg2, %c0_i32_8 : i32
    %10 = arith.extui %9 : i1 to i32
    %c0_i32_9 = arith.constant 0 : i32
    %11 = arith.cmpi ne, %10, %c0_i32_9 : i32
    scf.if %11 {
      %c0_10 = arith.constant 0 : index
      %c0_11 = arith.constant 0 : index
      %12 = vector.load %arg7[%c0_10, %c0_11] : memref<8x32xf32, #tpu.memory_space<vmem>>, vector<8x32xf32>
      %c0_12 = arith.constant 0 : index
      %c0_13 = arith.constant 0 : index
      %13 = vector.load %arg5[%c0_12, %c0_13] : memref<1x32xf32, #tpu.memory_space<vmem>>, vector<1x32xf32>
      %14 = vector.broadcast %13 : vector<1x32xf32> to vector<8x32xf32>
      %15 = arith.addf %12, %14 : vector<8x32xf32>
      %16 = arith.truncf %15 : vector<8x32xf32> to vector<8x32xbf16>
      %c0_14 = arith.constant 0 : index
      %c0_15 = arith.constant 0 : index
      %17 = vector.load %arg6[%c0_14, %c0_15] : memref<8x32xbf16, #tpu.memory_space<vmem>>, vector<8x32xbf16>
      tpu.vector_store %arg6[%c0_14, %c0_15], %16 {strides = array<i32>} : memref<8x32xbf16, #tpu.memory_space<vmem>>, vector<8x32xbf16>,
    } else {
    }
    return
  }
  func.func @transform_0(%arg0: i32, %arg1: i32, %arg2: i32) -> (i32, i32) {
    %c0_i32 = arith.constant 0 : i32
    return %arg0, %arg2 : i32, i32
  }
  func.func @transform_1(%arg0: i32, %arg1: i32, %arg2: i32) -> (i32, i32) {
    %c0_i32 = arith.constant 0 : i32
    return %arg2, %arg1 : i32, i32
  }
  func.func @transform_2(%arg0: i32, %arg1: i32, %arg2: i32) -> (i32, i32) {
    %c0_i32 = arith.constant 0 : i32
    %c0_i32_0 = arith.constant 0 : i32
    return %c0_i32, %arg1 : i32, i32
  }
  func.func @transform_3(%arg0: i32, %arg1: i32, %arg2: i32) -> (i32, i32) {
    %c0_i32 = arith.constant 0 : i32
    return %arg0, %arg1 : i32, i32
  }
}

module attributes {stable_mosaic.version = 11 : i64} {
  func.func @_linear_kernel(%arg0: i32, %arg1: i32, %arg2: i32, %arg3: memref<10x32xbf16, #tpu.memory_space<vmem>>, %arg4: memref<32x96xbf16, #tpu.memory_space<vmem>>, %arg5: memref<1x96xf32, #tpu.memory_space<vmem>>, %arg6: memref<1x32xf32, #tpu.memory_space<vmem>>, %arg7: memref<1x32xf32, #tpu.memory_space<vmem>>, %arg8: memref<10x96xbf16, #tpu.memory_space<vmem>>, %arg9: memref<10x96xf32, #tpu.memory_space<vmem>>, %arg10: memref<10x32xbf16, #tpu.memory_space<vmem>>) attributes {dimension_semantics = [#tpu.dimension_semantics<parallel>, #tpu.dimension_semantics<arbitrary>, #tpu.dimension_semantics<arbitrary>], iteration_bounds = array<i64: 1, 1, 1>, scalar_prefetch = 0 : i64, scratch_operands = 2 : i64, tpu.core_type = #tpu.core_type<tc>, window_params = [{transform_indices = @transform_0, window_bounds = array<i64: 10, 32>}, {transform_indices = @transform_1, window_bounds = array<i64: 32, 96>}, {transform_indices = @transform_2, window_bounds = array<i64: 1, 96>}, {transform_indices = @transform_3, window_bounds = array<i64: 1, 32>}, {transform_indices = @transform_4, window_bounds = array<i64: 1, 32>}, {transform_indices = @transform_5, window_bounds = array<i64: 10, 96>}]} {
    %c0_i32 = arith.constant 0 : i32
    %0 = arith.cmpi eq, %arg2, %c0_i32 : i32
    %1 = arith.extui %0 : i1 to i32
    %c0_i32_0 = arith.constant 0 : i32
    %2 = arith.cmpi ne, %1, %c0_i32_0 : i32
    scf.if %2 {
      %cst_12 = arith.constant 0.000000e+00 : f32
      %15 = vector.broadcast %cst_12 : f32 to vector<10x96xf32>
      %c0_13 = arith.constant 0 : index
      %c0_14 = arith.constant 0 : index
      %16 = vector.load %arg9[%c0_13, %c0_14] : memref<10x96xf32, #tpu.memory_space<vmem>>, vector<10x96xf32>
      tpu.vector_store %arg9[%c0_13, %c0_14], %15 {strides = array<i32>} : memref<10x96xf32, #tpu.memory_space<vmem>>, vector<10x96xf32>,
    } else {
    }
    %c0_i32_1 = arith.constant 0 : i32
    %3 = arith.cmpi eq, %arg1, %c0_i32_1 : i32
    %4 = arith.extui %3 : i1 to i32
    %c0_i32_2 = arith.constant 0 : i32
    %5 = arith.cmpi ne, %4, %c0_i32_2 : i32
    scf.if %5 {
      %c0_12 = arith.constant 0 : index
      %c0_13 = arith.constant 0 : index
      %15 = vector.load %arg3[%c0_12, %c0_13] : memref<10x32xbf16, #tpu.memory_space<vmem>>, vector<10x32xbf16>
      %16 = arith.extf %15 : vector<10x32xbf16> to vector<10x32xf32>
      %cst_14 = arith.constant dense<0.000000e+00> : vector<10xf32>
      %17 = vector.multi_reduction <add>, %16, %cst_14 [1] : vector<10x32xf32> to vector<10xf32>
      %18 = vector.shape_cast %17 : vector<10xf32> to vector<10x1xf32>
      %cst_15 = arith.constant 3.125000e-02 : f32
      %19 = vector.broadcast %cst_15 : f32 to vector<10x1xf32>
      %20 = arith.mulf %18, %19 : vector<10x1xf32>
      %21 = arith.mulf %16, %16 : vector<10x32xf32>
      %cst_16 = arith.constant dense<0.000000e+00> : vector<10xf32>
      %22 = vector.multi_reduction <add>, %21, %cst_16 [1] : vector<10x32xf32> to vector<10xf32>
      %23 = vector.shape_cast %22 : vector<10xf32> to vector<10x1xf32>
      %cst_17 = arith.constant 3.125000e-02 : f32
      %24 = vector.broadcast %cst_17 : f32 to vector<10x1xf32>
      %25 = arith.mulf %23, %24 : vector<10x1xf32>
      %26 = arith.mulf %20, %20 : vector<10x1xf32>
      %27 = arith.subf %25, %26 : vector<10x1xf32>
      %cst_18 = arith.constant 0.000000e+00 : f32
      %28 = vector.broadcast %cst_18 : f32 to vector<10x1xf32>
      %29 = arith.maximumf %27, %28 : vector<10x1xf32>
      %30 = vector.broadcast %20 : vector<10x1xf32> to vector<10x32xf32>
      %31 = arith.subf %16, %30 : vector<10x32xf32>
      %cst_19 = arith.constant 9.99999997E-7 : f32
      %32 = vector.broadcast %cst_19 : f32 to vector<10x1xf32>
      %33 = arith.addf %29, %32 : vector<10x1xf32>
      %34 = math.rsqrt %33 : vector<10x1xf32>
      %35 = vector.broadcast %34 : vector<10x1xf32> to vector<10x32xf32>
      %36 = arith.mulf %31, %35 : vector<10x32xf32>
      %c0_20 = arith.constant 0 : index
      %c0_21 = arith.constant 0 : index
      %37 = vector.load %arg6[%c0_20, %c0_21] : memref<1x32xf32, #tpu.memory_space<vmem>>, vector<1x32xf32>
      %38 = vector.broadcast %37 : vector<1x32xf32> to vector<10x32xf32>
      %39 = arith.mulf %36, %38 : vector<10x32xf32>
      %c0_22 = arith.constant 0 : index
      %c0_23 = arith.constant 0 : index
      %40 = vector.load %arg7[%c0_22, %c0_23] : memref<1x32xf32, #tpu.memory_space<vmem>>, vector<1x32xf32>
      %41 = vector.broadcast %40 : vector<1x32xf32> to vector<10x32xf32>
      %42 = arith.addf %39, %41 : vector<10x32xf32>
      %43 = arith.truncf %42 : vector<10x32xf32> to vector<10x32xbf16>
      %c0_24 = arith.constant 0 : index
      %c0_25 = arith.constant 0 : index
      %44 = vector.load %arg10[%c0_24, %c0_25] : memref<10x32xbf16, #tpu.memory_space<vmem>>, vector<10x32xbf16>
      tpu.vector_store %arg10[%c0_24, %c0_25], %43 {strides = array<i32>} : memref<10x32xbf16, #tpu.memory_space<vmem>>, vector<10x32xbf16>,
    } else {
    }
    %c0 = arith.constant 0 : index
    %c0_3 = arith.constant 0 : index
    %6 = vector.load %arg10[%c0, %c0_3] : memref<10x32xbf16, #tpu.memory_space<vmem>>, vector<10x32xbf16>
    %c0_4 = arith.constant 0 : index
    %c0_5 = arith.constant 0 : index
    %7 = vector.load %arg9[%c0_4, %c0_5] : memref<10x96xf32, #tpu.memory_space<vmem>>, vector<10x96xf32>
    %c0_6 = arith.constant 0 : index
    %c0_7 = arith.constant 0 : index
    %8 = vector.load %arg4[%c0_6, %c0_7] : memref<32x96xbf16, #tpu.memory_space<vmem>>, vector<32x96xbf16>
    %cst = arith.constant dense<0.000000e+00> : vector<10x96xf32>
    %9 = tpu.matmul %6, %8, %cst {dimension_numbers = #tpu.dot_dimension_numbers<[1], [0], [0], [1], [0, 0, 1, 1], [], []>} : vector<10x32xbf16>, vector<32x96xbf16>, vector<10x96xf32> -> vector<10x96xf32>
    %10 = arith.addf %7, %9 : vector<10x96xf32>
    %c0_8 = arith.constant 0 : index
    %c0_9 = arith.constant 0 : index
    %11 = vector.load %arg9[%c0_8, %c0_9] : memref<10x96xf32, #tpu.memory_space<vmem>>, vector<10x96xf32>
    tpu.vector_store %arg9[%c0_8, %c0_9], %10 {strides = array<i32>} : memref<10x96xf32, #tpu.memory_space<vmem>>, vector<10x96xf32>,
    %c0_i32_10 = arith.constant 0 : i32
    %12 = arith.cmpi eq, %arg2, %c0_i32_10 : i32
    %13 = arith.extui %12 : i1 to i32
    %c0_i32_11 = arith.constant 0 : i32
    %14 = arith.cmpi ne, %13, %c0_i32_11 : i32
    scf.if %14 {
      %c0_12 = arith.constant 0 : index
      %c0_13 = arith.constant 0 : index
      %15 = vector.load %arg9[%c0_12, %c0_13] : memref<10x96xf32, #tpu.memory_space<vmem>>, vector<10x96xf32>
      %c0_14 = arith.constant 0 : index
      %c0_15 = arith.constant 0 : index
      %16 = vector.load %arg5[%c0_14, %c0_15] : memref<1x96xf32, #tpu.memory_space<vmem>>, vector<1x96xf32>
      %17 = vector.broadcast %16 : vector<1x96xf32> to vector<10x96xf32>
      %18 = arith.addf %15, %17 : vector<10x96xf32>
      %19 = arith.truncf %18 : vector<10x96xf32> to vector<10x96xbf16>
      %c0_16 = arith.constant 0 : index
      %c0_17 = arith.constant 0 : index
      %20 = vector.load %arg8[%c0_16, %c0_17] : memref<10x96xbf16, #tpu.memory_space<vmem>>, vector<10x96xbf16>
      tpu.vector_store %arg8[%c0_16, %c0_17], %19 {strides = array<i32>} : memref<10x96xbf16, #tpu.memory_space<vmem>>, vector<10x96xbf16>,
    } else {
    }
    return
  }
  func.func @transform_0(%arg0: i32, %arg1: i32, %arg2: i32) -> (i32, i32) {
    %c0_i32 = arith.constant 0 : i32
    return %arg0, %arg2 : i32, i32
  }
  func.func @transform_1(%arg0: i32, %arg1: i32, %arg2: i32) -> (i32, i32) {
    %c0_i32 = arith.constant 0 : i32
    return %arg2, %arg1 : i32, i32
  }
  func.func @transform_2(%arg0: i32, %arg1: i32, %arg2: i32) -> (i32, i32) {
    %c0_i32 = arith.constant 0 : i32
    %c0_i32_0 = arith.constant 0 : i32
    return %c0_i32, %arg1 : i32, i32
  }
  func.func @transform_3(%arg0: i32, %arg1: i32, %arg2: i32) -> (i32, i32) {
    %c0_i32 = arith.constant 0 : i32
    %c0_i32_0 = arith.constant 0 : i32
    return %c0_i32, %arg2 : i32, i32
  }
  func.func @transform_4(%arg0: i32, %arg1: i32, %arg2: i32) -> (i32, i32) {
    %c0_i32 = arith.constant 0 : i32
    %c0_i32_0 = arith.constant 0 : i32
    return %c0_i32, %arg2 : i32, i32
  }
  func.func @transform_5(%arg0: i32, %arg1: i32, %arg2: i32) -> (i32, i32) {
    %c0_i32 = arith.constant 0 : i32
    return %arg0, %arg1 : i32, i32
  }
}

module attributes {stable_mosaic.version = 11 : i64} {
  func.func @_linear_kernel(%arg0: i32, %arg1: i32, %arg2: i32, %arg3: memref<10x32xbf16, #tpu.memory_space<vmem>>, %arg4: memref<32x32xbf16, #tpu.memory_space<vmem>>, %arg5: memref<1x32xf32, #tpu.memory_space<vmem>>, %arg6: memref<10x32xbf16, #tpu.memory_space<vmem>>, %arg7: memref<10x32xbf16, #tpu.memory_space<vmem>>, %arg8: memref<10x32xf32, #tpu.memory_space<vmem>>) attributes {dimension_semantics = [#tpu.dimension_semantics<parallel>, #tpu.dimension_semantics<parallel>, #tpu.dimension_semantics<arbitrary>], iteration_bounds = array<i64: 1, 1, 1>, scalar_prefetch = 0 : i64, scratch_operands = 1 : i64, tpu.core_type = #tpu.core_type<tc>, window_params = [{transform_indices = @transform_0, window_bounds = array<i64: 10, 32>}, {transform_indices = @transform_1, window_bounds = array<i64: 32, 32>}, {transform_indices = @transform_2, window_bounds = array<i64: 1, 32>}, {transform_indices = @transform_3, window_bounds = array<i64: 10, 32>}, {transform_indices = @transform_4, window_bounds = array<i64: 10, 32>}]} {
    %c0_i32 = arith.constant 0 : i32
    %0 = arith.cmpi eq, %arg2, %c0_i32 : i32
    %1 = arith.extui %0 : i1 to i32
    %c0_i32_0 = arith.constant 0 : i32
    %2 = arith.cmpi ne, %1, %c0_i32_0 : i32
    scf.if %2 {
      %cst_10 = arith.constant 0.000000e+00 : f32
      %12 = vector.broadcast %cst_10 : f32 to vector<10x32xf32>
      %c0_11 = arith.constant 0 : index
      %c0_12 = arith.constant 0 : index
      %13 = vector.load %arg8[%c0_11, %c0_12] : memref<10x32xf32, #tpu.memory_space<vmem>>, vector<10x32xf32>
      tpu.vector_store %arg8[%c0_11, %c0_12], %12 {strides = array<i32>} : memref<10x32xf32, #tpu.memory_space<vmem>>, vector<10x32xf32>,
    } else {
    }
    %c0 = arith.constant 0 : index
    %c0_1 = arith.constant 0 : index
    %3 = vector.load %arg3[%c0, %c0_1] : memref<10x32xbf16, #tpu.memory_space<vmem>>, vector<10x32xbf16>
    %c0_2 = arith.constant 0 : index
    %c0_3 = arith.constant 0 : index
    %4 = vector.load %arg8[%c0_2, %c0_3] : memref<10x32xf32, #tpu.memory_space<vmem>>, vector<10x32xf32>
    %c0_4 = arith.constant 0 : index
    %c0_5 = arith.constant 0 : index
    %5 = vector.load %arg4[%c0_4, %c0_5] : memref<32x32xbf16, #tpu.memory_space<vmem>>, vector<32x32xbf16>
    %cst = arith.constant dense<0.000000e+00> : vector<10x32xf32>
    %6 = tpu.matmul %3, %5, %cst {dimension_numbers = #tpu.dot_dimension_numbers<[1], [0], [0], [1], [0, 0, 1, 1], [], []>} : vector<10x32xbf16>, vector<32x32xbf16>, vector<10x32xf32> -> vector<10x32xf32>
    %7 = arith.addf %4, %6 : vector<10x32xf32>
    %c0_6 = arith.constant 0 : index
    %c0_7 = arith.constant 0 : index
    %8 = vector.load %arg8[%c0_6, %c0_7] : memref<10x32xf32, #tpu.memory_space<vmem>>, vector<10x32xf32>
    tpu.vector_store %arg8[%c0_6, %c0_7], %7 {strides = array<i32>} : memref<10x32xf32, #tpu.memory_space<vmem>>, vector<10x32xf32>,
    %c0_i32_8 = arith.constant 0 : i32
    %9 = arith.cmpi eq, %arg2, %c0_i32_8 : i32
    %10 = arith.extui %9 : i1 to i32
    %c0_i32_9 = arith.constant 0 : i32
    %11 = arith.cmpi ne, %10, %c0_i32_9 : i32
    scf.if %11 {
      %c0_10 = arith.constant 0 : index
      %c0_11 = arith.constant 0 : index
      %12 = vector.load %arg8[%c0_10, %c0_11] : memref<10x32xf32, #tpu.memory_space<vmem>>, vector<10x32xf32>
      %c0_12 = arith.constant 0 : index
      %c0_13 = arith.constant 0 : index
      %13 = vector.load %arg5[%c0_12, %c0_13] : memref<1x32xf32, #tpu.memory_space<vmem>>, vector<1x32xf32>
      %14 = vector.broadcast %13 : vector<1x32xf32> to vector<10x32xf32>
      %15 = arith.addf %12, %14 : vector<10x32xf32>
      %c0_14 = arith.constant 0 : index
      %c0_15 = arith.constant 0 : index
      %16 = vector.load %arg6[%c0_14, %c0_15] : memref<10x32xbf16, #tpu.memory_space<vmem>>, vector<10x32xbf16>
      %17 = arith.extf %16 : vector<10x32xbf16> to vector<10x32xf32>
      %18 = arith.addf %15, %17 : vector<10x32xf32>
      %19 = arith.truncf %18 : vector<10x32xf32> to vector<10x32xbf16>
      %c0_16 = arith.constant 0 : index
      %c0_17 = arith.constant 0 : index
      %20 = vector.load %arg7[%c0_16, %c0_17] : memref<10x32xbf16, #tpu.memory_space<vmem>>, vector<10x32xbf16>
      tpu.vector_store %arg7[%c0_16, %c0_17], %19 {strides = array<i32>} : memref<10x32xbf16, #tpu.memory_space<vmem>>, vector<10x32xbf16>,
    } else {
    }
    return
  }
  func.func @transform_0(%arg0: i32, %arg1: i32, %arg2: i32) -> (i32, i32) {
    %c0_i32 = arith.constant 0 : i32
    return %arg0, %arg2 : i32, i32
  }
  func.func @transform_1(%arg0: i32, %arg1: i32, %arg2: i32) -> (i32, i32) {
    %c0_i32 = arith.constant 0 : i32
    return %arg2, %arg1 : i32, i32
  }
  func.func @transform_2(%arg0: i32, %arg1: i32, %arg2: i32) -> (i32, i32) {
    %c0_i32 = arith.constant 0 : i32
    %c0_i32_0 = arith.constant 0 : i32
    return %c0_i32, %arg1 : i32, i32
  }
  func.func @transform_3(%arg0: i32, %arg1: i32, %arg2: i32) -> (i32, i32) {
    %c0_i32 = arith.constant 0 : i32
    return %arg0, %arg1 : i32, i32
  }
  func.func @transform_4(%arg0: i32, %arg1: i32, %arg2: i32) -> (i32, i32) {
    %c0_i32 = arith.constant 0 : i32
    return %arg0, %arg1 : i32, i32
  }
}

module attributes {stable_mosaic.version = 11 : i64} {
  func.func @_attn_kernel(%arg0: i32, %arg1: i32, %arg2: memref<1x5x96xbf16, #tpu.memory_space<vmem>>, %arg3: memref<1x5x32xbf16, #tpu.memory_space<vmem>>) attributes {dimension_semantics = [#tpu.dimension_semantics<parallel>, #tpu.dimension_semantics<parallel>], iteration_bounds = array<i64: 2, 1>, scalar_prefetch = 0 : i64, scratch_operands = 0 : i64, tpu.core_type = #tpu.core_type<tc>, window_params = [{transform_indices = @transform_0, window_bounds = array<i64: 1, 5, 96>}, {transform_indices = @transform_1, window_bounds = array<i64: 1, 5, 32>}]} {
    %c0 = arith.constant 0 : index
    %c0_0 = arith.constant 0 : index
    %c0_1 = arith.constant 0 : index
    %0 = vector.load %arg2[%c0, %c0_0, %c0_1] : memref<1x5x96xbf16, #tpu.memory_space<vmem>>, vector<1x5x96xbf16>
    %1 = vector.shape_cast %0 : vector<1x5x96xbf16> to vector<5x96xbf16>
    %2 = vector.extract_strided_slice %1 {offsets = [0, 0], sizes = [5, 16], strides = [1, 1]} : vector<5x96xbf16> to vector<5x16xbf16>
    %3 = vector.extract_strided_slice %1 {offsets = [0, 32], sizes = [5, 16], strides = [1, 1]} : vector<5x96xbf16> to vector<5x16xbf16>
    %4 = vector.extract_strided_slice %1 {offsets = [0, 64], sizes = [5, 16], strides = [1, 1]} : vector<5x96xbf16> to vector<5x16xbf16>
    %cst = arith.constant dense<0.000000e+00> : vector<5x5xf32>
    %5 = tpu.matmul %2, %3, %cst {dimension_numbers = #tpu.dot_dimension_numbers<[1], [1], [0], [0], [0, 0, 1, 0], [], []>} : vector<5x16xbf16>, vector<5x16xbf16>, vector<5x5xf32> -> vector<5x5xf32>
    %cst_2 = arith.constant dense<0xFF800000> : vector<5xf32>
    %6 = vector.multi_reduction <maximumf>, %5, %cst_2 [1] : vector<5x5xf32> to vector<5xf32>
    %7 = vector.shape_cast %6 : vector<5xf32> to vector<5x1xf32>
    %8 = vector.broadcast %7 : vector<5x1xf32> to vector<5x5xf32>
    %9 = arith.subf %5, %8 : vector<5x5xf32>
    %10 = math.exp %9 : vector<5x5xf32>
    %cst_3 = arith.constant dense<0.000000e+00> : vector<5xf32>
    %11 = vector.multi_reduction <add>, %10, %cst_3 [1] : vector<5x5xf32> to vector<5xf32>
    %12 = vector.shape_cast %11 : vector<5xf32> to vector<5x1xf32>
    %13 = tpu.reciprocal %12 {approx = true} : vector<5x1xf32> -> vector<5x1xf32>
    %14 = vector.broadcast %13 : vector<5x1xf32> to vector<5x5xf32>
    %15 = arith.mulf %10, %14 : vector<5x5xf32>
    %16 = arith.truncf %15 : vector<5x5xf32> to vector<5x5xbf16>
    %cst_4 = arith.constant dense<0.000000e+00> : vector<5x16xf32>
    %17 = tpu.matmul %16, %4, %cst_4 {dimension_numbers = #tpu.dot_dimension_numbers<[1], [0], [0], [1], [0, 0, 1, 1], [], []>} : vector<5x5xbf16>, vector<5x16xbf16>, vector<5x16xf32> -> vector<5x16xf32>
    %18 = vector.extract_strided_slice %1 {offsets = [0, 16], sizes = [5, 16], strides = [1, 1]} : vector<5x96xbf16> to vector<5x16xbf16>
    %19 = vector.extract_strided_slice %1 {offsets = [0, 48], sizes = [5, 16], strides = [1, 1]} : vector<5x96xbf16> to vector<5x16xbf16>
    %20 = vector.extract_strided_slice %1 {offsets = [0, 80], sizes = [5, 16], strides = [1, 1]} : vector<5x96xbf16> to vector<5x16xbf16>
    %cst_5 = arith.constant dense<0.000000e+00> : vector<5x5xf32>
    %21 = tpu.matmul %18, %19, %cst_5 {dimension_numbers = #tpu.dot_dimension_numbers<[1], [1], [0], [0], [0, 0, 1, 0], [], []>} : vector<5x16xbf16>, vector<5x16xbf16>, vector<5x5xf32> -> vector<5x5xf32>
    %cst_6 = arith.constant dense<0xFF800000> : vector<5xf32>
    %22 = vector.multi_reduction <maximumf>, %21, %cst_6 [1] : vector<5x5xf32> to vector<5xf32>
    %23 = vector.shape_cast %22 : vector<5xf32> to vector<5x1xf32>
    %24 = vector.broadcast %23 : vector<5x1xf32> to vector<5x5xf32>
    %25 = arith.subf %21, %24 : vector<5x5xf32>
    %26 = math.exp %25 : vector<5x5xf32>
    %cst_7 = arith.constant dense<0.000000e+00> : vector<5xf32>
    %27 = vector.multi_reduction <add>, %26, %cst_7 [1] : vector<5x5xf32> to vector<5xf32>
    %28 = vector.shape_cast %27 : vector<5xf32> to vector<5x1xf32>
    %29 = tpu.reciprocal %28 {approx = true} : vector<5x1xf32> -> vector<5x1xf32>
    %30 = vector.broadcast %29 : vector<5x1xf32> to vector<5x5xf32>
    %31 = arith.mulf %26, %30 : vector<5x5xf32>
    %32 = arith.truncf %31 : vector<5x5xf32> to vector<5x5xbf16>
    %cst_8 = arith.constant dense<0.000000e+00> : vector<5x16xf32>
    %33 = tpu.matmul %32, %20, %cst_8 {dimension_numbers = #tpu.dot_dimension_numbers<[1], [0], [0], [1], [0, 0, 1, 1], [], []>} : vector<5x5xbf16>, vector<5x16xbf16>, vector<5x16xf32> -> vector<5x16xf32>
    %34 = tpu.concatenate %17, %33 in 1 : vector<5x16xf32>, vector<5x16xf32> -> vector<5x32xf32>
    %35 = arith.truncf %34 : vector<5x32xf32> to vector<5x32xbf16>
    %c0_9 = arith.constant 0 : index
    %c0_10 = arith.constant 0 : index
    %c0_11 = arith.constant 0 : index
    %36 = vector.load %arg3[%c0_9, %c0_10, %c0_11] : memref<1x5x32xbf16, #tpu.memory_space<vmem>>, vector<1x5x32xbf16>
    %37 = vector.shape_cast %36 : vector<1x5x32xbf16> to vector<5x32xbf16>
    %38 = vector.shape_cast %35 : vector<5x32xbf16> to vector<1x5x32xbf16>
    tpu.vector_store %arg3[%c0_9, %c0_10, %c0_11], %38 {strides = array<i32>} : memref<1x5x32xbf16, #tpu.memory_space<vmem>>, vector<1x5x32xbf16>,
    return
  }
  func.func @transform_0(%arg0: i32, %arg1: i32) -> (i32, i32, i32) {
    %c0_i32 = arith.constant 0 : i32
    %c0_i32_0 = arith.constant 0 : i32
    return %arg0, %c0_i32, %arg1 : i32, i32, i32
  }
  func.func @transform_1(%arg0: i32, %arg1: i32) -> (i32, i32, i32) {
    %c0_i32 = arith.constant 0 : i32
    %c0_i32_0 = arith.constant 0 : i32
    return %arg0, %c0_i32, %arg1 : i32, i32, i32
  }
}

module attributes {stable_mosaic.version = 11 : i64} {
  func.func @_linear_kernel(%arg0: i32, %arg1: i32, %arg2: i32, %arg3: memref<10x128xbf16, #tpu.memory_space<vmem>>, %arg4: memref<128x32xbf16, #tpu.memory_space<vmem>>, %arg5: memref<1x32xf32, #tpu.memory_space<vmem>>, %arg6: memref<10x32xbf16, #tpu.memory_space<vmem>>, %arg7: memref<10x32xbf16, #tpu.memory_space<vmem>>, %arg8: memref<10x32xf32, #tpu.memory_space<vmem>>) attributes {dimension_semantics = [#tpu.dimension_semantics<parallel>, #tpu.dimension_semantics<parallel>, #tpu.dimension_semantics<arbitrary>], iteration_bounds = array<i64: 1, 1, 1>, scalar_prefetch = 0 : i64, scratch_operands = 1 : i64, tpu.core_type = #tpu.core_type<tc>, window_params = [{transform_indices = @transform_0, window_bounds = array<i64: 10, 128>}, {transform_indices = @transform_1, window_bounds = array<i64: 128, 32>}, {transform_indices = @transform_2, window_bounds = array<i64: 1, 32>}, {transform_indices = @transform_3, window_bounds = array<i64: 10, 32>}, {transform_indices = @transform_4, window_bounds = array<i64: 10, 32>}]} {
    %c0_i32 = arith.constant 0 : i32
    %0 = arith.cmpi eq, %arg2, %c0_i32 : i32
    %1 = arith.extui %0 : i1 to i32
    %c0_i32_0 = arith.constant 0 : i32
    %2 = arith.cmpi ne, %1, %c0_i32_0 : i32
    scf.if %2 {
      %cst_10 = arith.constant 0.000000e+00 : f32
      %12 = vector.broadcast %cst_10 : f32 to vector<10x32xf32>
      %c0_11 = arith.constant 0 : index
      %c0_12 = arith.constant 0 : index
      %13 = vector.load %arg8[%c0_11, %c0_12] : memref<10x32xf32, #tpu.memory_space<vmem>>, vector<10x32xf32>
      tpu.vector_store %arg8[%c0_11, %c0_12], %12 {strides = array<i32>} : memref<10x32xf32, #tpu.memory_space<vmem>>, vector<10x32xf32>,
    } else {
    }
    %c0 = arith.constant 0 : index
    %c0_1 = arith.constant 0 : index
    %3 = vector.load %arg3[%c0, %c0_1] : memref<10x128xbf16, #tpu.memory_space<vmem>>, vector<10x128xbf16>
    %c0_2 = arith.constant 0 : index
    %c0_3 = arith.constant 0 : index
    %4 = vector.load %arg8[%c0_2, %c0_3] : memref<10x32xf32, #tpu.memory_space<vmem>>, vector<10x32xf32>
    %c0_4 = arith.constant 0 : index
    %c0_5 = arith.constant 0 : index
    %5 = vector.load %arg4[%c0_4, %c0_5] : memref<128x32xbf16, #tpu.memory_space<vmem>>, vector<128x32xbf16>
    %cst = arith.constant dense<0.000000e+00> : vector<10x32xf32>
    %6 = tpu.matmul %3, %5, %cst {dimension_numbers = #tpu.dot_dimension_numbers<[1], [0], [0], [1], [0, 0, 1, 1], [], []>} : vector<10x128xbf16>, vector<128x32xbf16>, vector<10x32xf32> -> vector<10x32xf32>
    %7 = arith.addf %4, %6 : vector<10x32xf32>
    %c0_6 = arith.constant 0 : index
    %c0_7 = arith.constant 0 : index
    %8 = vector.load %arg8[%c0_6, %c0_7] : memref<10x32xf32, #tpu.memory_space<vmem>>, vector<10x32xf32>
    tpu.vector_store %arg8[%c0_6, %c0_7], %7 {strides = array<i32>} : memref<10x32xf32, #tpu.memory_space<vmem>>, vector<10x32xf32>,
    %c0_i32_8 = arith.constant 0 : i32
    %9 = arith.cmpi eq, %arg2, %c0_i32_8 : i32
    %10 = arith.extui %9 : i1 to i32
    %c0_i32_9 = arith.constant 0 : i32
    %11 = arith.cmpi ne, %10, %c0_i32_9 : i32
    scf.if %11 {
      %c0_10 = arith.constant 0 : index
      %c0_11 = arith.constant 0 : index
      %12 = vector.load %arg8[%c0_10, %c0_11] : memref<10x32xf32, #tpu.memory_space<vmem>>, vector<10x32xf32>
      %c0_12 = arith.constant 0 : index
      %c0_13 = arith.constant 0 : index
      %13 = vector.load %arg5[%c0_12, %c0_13] : memref<1x32xf32, #tpu.memory_space<vmem>>, vector<1x32xf32>
      %14 = vector.broadcast %13 : vector<1x32xf32> to vector<10x32xf32>
      %15 = arith.addf %12, %14 : vector<10x32xf32>
      %c0_14 = arith.constant 0 : index
      %c0_15 = arith.constant 0 : index
      %16 = vector.load %arg6[%c0_14, %c0_15] : memref<10x32xbf16, #tpu.memory_space<vmem>>, vector<10x32xbf16>
      %17 = arith.extf %16 : vector<10x32xbf16> to vector<10x32xf32>
      %18 = arith.addf %15, %17 : vector<10x32xf32>
      %19 = arith.truncf %18 : vector<10x32xf32> to vector<10x32xbf16>
      %c0_16 = arith.constant 0 : index
      %c0_17 = arith.constant 0 : index
      %20 = vector.load %arg7[%c0_16, %c0_17] : memref<10x32xbf16, #tpu.memory_space<vmem>>, vector<10x32xbf16>
      tpu.vector_store %arg7[%c0_16, %c0_17], %19 {strides = array<i32>} : memref<10x32xbf16, #tpu.memory_space<vmem>>, vector<10x32xbf16>,
    } else {
    }
    return
  }
  func.func @transform_0(%arg0: i32, %arg1: i32, %arg2: i32) -> (i32, i32) {
    %c0_i32 = arith.constant 0 : i32
    return %arg0, %arg2 : i32, i32
  }
  func.func @transform_1(%arg0: i32, %arg1: i32, %arg2: i32) -> (i32, i32) {
    %c0_i32 = arith.constant 0 : i32
    return %arg2, %arg1 : i32, i32
  }
  func.func @transform_2(%arg0: i32, %arg1: i32, %arg2: i32) -> (i32, i32) {
    %c0_i32 = arith.constant 0 : i32
    %c0_i32_0 = arith.constant 0 : i32
    return %c0_i32, %arg1 : i32, i32
  }
  func.func @transform_3(%arg0: i32, %arg1: i32, %arg2: i32) -> (i32, i32) {
    %c0_i32 = arith.constant 0 : i32
    return %arg0, %arg1 : i32, i32
  }
  func.func @transform_4(%arg0: i32, %arg1: i32, %arg2: i32) -> (i32, i32) {
    %c0_i32 = arith.constant 0 : i32
    return %arg0, %arg1 : i32, i32
  }
}

module attributes {stable_mosaic.version = 11 : i64} {
  func.func @_linear_kernel(%arg0: i32, %arg1: i32, %arg2: i32, %arg3: memref<10x32xbf16, #tpu.memory_space<vmem>>, %arg4: memref<32x128xbf16, #tpu.memory_space<vmem>>, %arg5: memref<1x128xf32, #tpu.memory_space<vmem>>, %arg6: memref<1x32xf32, #tpu.memory_space<vmem>>, %arg7: memref<1x32xf32, #tpu.memory_space<vmem>>, %arg8: memref<10x128xbf16, #tpu.memory_space<vmem>>, %arg9: memref<10x128xf32, #tpu.memory_space<vmem>>, %arg10: memref<10x32xbf16, #tpu.memory_space<vmem>>) attributes {dimension_semantics = [#tpu.dimension_semantics<parallel>, #tpu.dimension_semantics<arbitrary>, #tpu.dimension_semantics<arbitrary>], iteration_bounds = array<i64: 1, 1, 1>, scalar_prefetch = 0 : i64, scratch_operands = 2 : i64, tpu.core_type = #tpu.core_type<tc>, window_params = [{transform_indices = @transform_0, window_bounds = array<i64: 10, 32>}, {transform_indices = @transform_1, window_bounds = array<i64: 32, 128>}, {transform_indices = @transform_2, window_bounds = array<i64: 1, 128>}, {transform_indices = @transform_3, window_bounds = array<i64: 1, 32>}, {transform_indices = @transform_4, window_bounds = array<i64: 1, 32>}, {transform_indices = @transform_5, window_bounds = array<i64: 10, 128>}]} {
    %c0_i32 = arith.constant 0 : i32
    %0 = arith.cmpi eq, %arg2, %c0_i32 : i32
    %1 = arith.extui %0 : i1 to i32
    %c0_i32_0 = arith.constant 0 : i32
    %2 = arith.cmpi ne, %1, %c0_i32_0 : i32
    scf.if %2 {
      %cst_12 = arith.constant 0.000000e+00 : f32
      %15 = vector.broadcast %cst_12 : f32 to vector<10x128xf32>
      %c0_13 = arith.constant 0 : index
      %c0_14 = arith.constant 0 : index
      %16 = vector.load %arg9[%c0_13, %c0_14] : memref<10x128xf32, #tpu.memory_space<vmem>>, vector<10x128xf32>
      tpu.vector_store %arg9[%c0_13, %c0_14], %15 {strides = array<i32>} : memref<10x128xf32, #tpu.memory_space<vmem>>, vector<10x128xf32>,
    } else {
    }
    %c0_i32_1 = arith.constant 0 : i32
    %3 = arith.cmpi eq, %arg1, %c0_i32_1 : i32
    %4 = arith.extui %3 : i1 to i32
    %c0_i32_2 = arith.constant 0 : i32
    %5 = arith.cmpi ne, %4, %c0_i32_2 : i32
    scf.if %5 {
      %c0_12 = arith.constant 0 : index
      %c0_13 = arith.constant 0 : index
      %15 = vector.load %arg3[%c0_12, %c0_13] : memref<10x32xbf16, #tpu.memory_space<vmem>>, vector<10x32xbf16>
      %16 = arith.extf %15 : vector<10x32xbf16> to vector<10x32xf32>
      %cst_14 = arith.constant dense<0.000000e+00> : vector<10xf32>
      %17 = vector.multi_reduction <add>, %16, %cst_14 [1] : vector<10x32xf32> to vector<10xf32>
      %18 = vector.shape_cast %17 : vector<10xf32> to vector<10x1xf32>
      %cst_15 = arith.constant 3.125000e-02 : f32
      %19 = vector.broadcast %cst_15 : f32 to vector<10x1xf32>
      %20 = arith.mulf %18, %19 : vector<10x1xf32>
      %21 = arith.mulf %16, %16 : vector<10x32xf32>
      %cst_16 = arith.constant dense<0.000000e+00> : vector<10xf32>
      %22 = vector.multi_reduction <add>, %21, %cst_16 [1] : vector<10x32xf32> to vector<10xf32>
      %23 = vector.shape_cast %22 : vector<10xf32> to vector<10x1xf32>
      %cst_17 = arith.constant 3.125000e-02 : f32
      %24 = vector.broadcast %cst_17 : f32 to vector<10x1xf32>
      %25 = arith.mulf %23, %24 : vector<10x1xf32>
      %26 = arith.mulf %20, %20 : vector<10x1xf32>
      %27 = arith.subf %25, %26 : vector<10x1xf32>
      %cst_18 = arith.constant 0.000000e+00 : f32
      %28 = vector.broadcast %cst_18 : f32 to vector<10x1xf32>
      %29 = arith.maximumf %27, %28 : vector<10x1xf32>
      %30 = vector.broadcast %20 : vector<10x1xf32> to vector<10x32xf32>
      %31 = arith.subf %16, %30 : vector<10x32xf32>
      %cst_19 = arith.constant 9.99999997E-7 : f32
      %32 = vector.broadcast %cst_19 : f32 to vector<10x1xf32>
      %33 = arith.addf %29, %32 : vector<10x1xf32>
      %34 = math.rsqrt %33 : vector<10x1xf32>
      %35 = vector.broadcast %34 : vector<10x1xf32> to vector<10x32xf32>
      %36 = arith.mulf %31, %35 : vector<10x32xf32>
      %c0_20 = arith.constant 0 : index
      %c0_21 = arith.constant 0 : index
      %37 = vector.load %arg6[%c0_20, %c0_21] : memref<1x32xf32, #tpu.memory_space<vmem>>, vector<1x32xf32>
      %38 = vector.broadcast %37 : vector<1x32xf32> to vector<10x32xf32>
      %39 = arith.mulf %36, %38 : vector<10x32xf32>
      %c0_22 = arith.constant 0 : index
      %c0_23 = arith.constant 0 : index
      %40 = vector.load %arg7[%c0_22, %c0_23] : memref<1x32xf32, #tpu.memory_space<vmem>>, vector<1x32xf32>
      %41 = vector.broadcast %40 : vector<1x32xf32> to vector<10x32xf32>
      %42 = arith.addf %39, %41 : vector<10x32xf32>
      %43 = arith.truncf %42 : vector<10x32xf32> to vector<10x32xbf16>
      %c0_24 = arith.constant 0 : index
      %c0_25 = arith.constant 0 : index
      %44 = vector.load %arg10[%c0_24, %c0_25] : memref<10x32xbf16, #tpu.memory_space<vmem>>, vector<10x32xbf16>
      tpu.vector_store %arg10[%c0_24, %c0_25], %43 {strides = array<i32>} : memref<10x32xbf16, #tpu.memory_space<vmem>>, vector<10x32xbf16>,
    } else {
    }
    %c0 = arith.constant 0 : index
    %c0_3 = arith.constant 0 : index
    %6 = vector.load %arg10[%c0, %c0_3] : memref<10x32xbf16, #tpu.memory_space<vmem>>, vector<10x32xbf16>
    %c0_4 = arith.constant 0 : index
    %c0_5 = arith.constant 0 : index
    %7 = vector.load %arg9[%c0_4, %c0_5] : memref<10x128xf32, #tpu.memory_space<vmem>>, vector<10x128xf32>
    %c0_6 = arith.constant 0 : index
    %c0_7 = arith.constant 0 : index
    %8 = vector.load %arg4[%c0_6, %c0_7] : memref<32x128xbf16, #tpu.memory_space<vmem>>, vector<32x128xbf16>
    %cst = arith.constant dense<0.000000e+00> : vector<10x128xf32>
    %9 = tpu.matmul %6, %8, %cst {dimension_numbers = #tpu.dot_dimension_numbers<[1], [0], [0], [1], [0, 0, 1, 1], [], []>} : vector<10x32xbf16>, vector<32x128xbf16>, vector<10x128xf32> -> vector<10x128xf32>
    %10 = arith.addf %7, %9 : vector<10x128xf32>
    %c0_8 = arith.constant 0 : index
    %c0_9 = arith.constant 0 : index
    %11 = vector.load %arg9[%c0_8, %c0_9] : memref<10x128xf32, #tpu.memory_space<vmem>>, vector<10x128xf32>
    tpu.vector_store %arg9[%c0_8, %c0_9], %10 {strides = array<i32>} : memref<10x128xf32, #tpu.memory_space<vmem>>, vector<10x128xf32>,
    %c0_i32_10 = arith.constant 0 : i32
    %12 = arith.cmpi eq, %arg2, %c0_i32_10 : i32
    %13 = arith.extui %12 : i1 to i32
    %c0_i32_11 = arith.constant 0 : i32
    %14 = arith.cmpi ne, %13, %c0_i32_11 : i32
    scf.if %14 {
      %c0_12 = arith.constant 0 : index
      %c0_13 = arith.constant 0 : index
      %15 = vector.load %arg9[%c0_12, %c0_13] : memref<10x128xf32, #tpu.memory_space<vmem>>, vector<10x128xf32>
      %c0_14 = arith.constant 0 : index
      %c0_15 = arith.constant 0 : index
      %16 = vector.load %arg5[%c0_14, %c0_15] : memref<1x128xf32, #tpu.memory_space<vmem>>, vector<1x128xf32>
      %17 = vector.broadcast %16 : vector<1x128xf32> to vector<10x128xf32>
      %18 = arith.addf %15, %17 : vector<10x128xf32>
      %cst_16 = arith.constant 5.000000e-01 : f32
      %19 = vector.broadcast %cst_16 : f32 to vector<10x128xf32>
      %20 = arith.mulf %19, %18 : vector<10x128xf32>
      %cst_17 = arith.constant 4.471500e-02 : f32
      %21 = vector.broadcast %cst_17 : f32 to vector<10x128xf32>
      %22 = arith.mulf %21, %18 : vector<10x128xf32>
      %23 = arith.mulf %22, %18 : vector<10x128xf32>
      %24 = arith.mulf %23, %18 : vector<10x128xf32>
      %25 = arith.addf %18, %24 : vector<10x128xf32>
      %cst_18 = arith.constant 0.797884583 : f32
      %26 = vector.broadcast %cst_18 : f32 to vector<10x128xf32>
      %27 = arith.mulf %26, %25 : vector<10x128xf32>
      %28 = math.tanh %27 : vector<10x128xf32>
      %cst_19 = arith.constant 1.000000e+00 : f32
      %29 = vector.broadcast %cst_19 : f32 to vector<10x128xf32>
      %30 = arith.addf %29, %28 : vector<10x128xf32>
      %31 = arith.mulf %20, %30 : vector<10x128xf32>
      %32 = arith.truncf %31 : vector<10x128xf32> to vector<10x128xbf16>
      %c0_20 = arith.constant 0 : index
      %c0_21 = arith.constant 0 : index
      %33 = vector.load %arg8[%c0_20, %c0_21] : memref<10x128xbf16, #tpu.memory_space<vmem>>, vector<10x128xbf16>
      tpu.vector_store %arg8[%c0_20, %c0_21], %32 {strides = array<i32>} : memref<10x128xbf16, #tpu.memory_space<vmem>>, vector<10x128xbf16>,
    } else {
    }
    return
  }
  func.func @transform_0(%arg0: i32, %arg1: i32, %arg2: i32) -> (i32, i32) {
    %c0_i32 = arith.constant 0 : i32
    return %arg0, %arg2 : i32, i32
  }
  func.func @transform_1(%arg0: i32, %arg1: i32, %arg2: i32) -> (i32, i32) {
    %c0_i32 = arith.constant 0 : i32
    return %arg2, %arg1 : i32, i32
  }
  func.func @transform_2(%arg0: i32, %arg1: i32, %arg2: i32) -> (i32, i32) {
    %c0_i32 = arith.constant 0 : i32
    %c0_i32_0 = arith.constant 0 : i32
    return %c0_i32, %arg1 : i32, i32
  }
  func.func @transform_3(%arg0: i32, %arg1: i32, %arg2: i32) -> (i32, i32) {
    %c0_i32 = arith.constant 0 : i32
    %c0_i32_0 = arith.constant 0 : i32
    return %c0_i32, %arg2 : i32, i32
  }
  func.func @transform_4(%arg0: i32, %arg1: i32, %arg2: i32) -> (i32, i32) {
    %c0_i32 = arith.constant 0 : i32
    %c0_i32_0 = arith.constant 0 : i32
    return %c0_i32, %arg2 : i32, i32
  }
  func.func @transform_5(%arg0: i32, %arg1: i32, %arg2: i32) -> (i32, i32) {
    %c0_i32 = arith.constant 0 : i32
    return %arg0, %arg1 : i32, i32
  }
}

module attributes {stable_mosaic.version = 11 : i64} {
  func.func @_linear_kernel(%arg0: i32, %arg1: i32, %arg2: i32, %arg3: memref<2x32xbf16, #tpu.memory_space<vmem>>, %arg4: memref<32x10xbf16, #tpu.memory_space<vmem>>, %arg5: memref<1x10xf32, #tpu.memory_space<vmem>>, %arg6: memref<1x32xf32, #tpu.memory_space<vmem>>, %arg7: memref<1x32xf32, #tpu.memory_space<vmem>>, %arg8: memref<2x10xf32, #tpu.memory_space<vmem>>, %arg9: memref<2x10xf32, #tpu.memory_space<vmem>>, %arg10: memref<2x32xbf16, #tpu.memory_space<vmem>>) attributes {dimension_semantics = [#tpu.dimension_semantics<parallel>, #tpu.dimension_semantics<arbitrary>, #tpu.dimension_semantics<arbitrary>], iteration_bounds = array<i64: 1, 1, 1>, scalar_prefetch = 0 : i64, scratch_operands = 2 : i64, tpu.core_type = #tpu.core_type<tc>, window_params = [{transform_indices = @transform_0, window_bounds = array<i64: 2, 32>}, {transform_indices = @transform_1, window_bounds = array<i64: 32, 10>}, {transform_indices = @transform_2, window_bounds = array<i64: 1, 10>}, {transform_indices = @transform_3, window_bounds = array<i64: 1, 32>}, {transform_indices = @transform_4, window_bounds = array<i64: 1, 32>}, {transform_indices = @transform_5, window_bounds = array<i64: 2, 10>}]} {
    %c0_i32 = arith.constant 0 : i32
    %0 = arith.cmpi eq, %arg2, %c0_i32 : i32
    %1 = arith.extui %0 : i1 to i32
    %c0_i32_0 = arith.constant 0 : i32
    %2 = arith.cmpi ne, %1, %c0_i32_0 : i32
    scf.if %2 {
      %cst_12 = arith.constant 0.000000e+00 : f32
      %15 = vector.broadcast %cst_12 : f32 to vector<2x10xf32>
      %c0_13 = arith.constant 0 : index
      %c0_14 = arith.constant 0 : index
      %16 = vector.load %arg9[%c0_13, %c0_14] : memref<2x10xf32, #tpu.memory_space<vmem>>, vector<2x10xf32>
      tpu.vector_store %arg9[%c0_13, %c0_14], %15 {strides = array<i32>} : memref<2x10xf32, #tpu.memory_space<vmem>>, vector<2x10xf32>,
    } else {
    }
    %c0_i32_1 = arith.constant 0 : i32
    %3 = arith.cmpi eq, %arg1, %c0_i32_1 : i32
    %4 = arith.extui %3 : i1 to i32
    %c0_i32_2 = arith.constant 0 : i32
    %5 = arith.cmpi ne, %4, %c0_i32_2 : i32
    scf.if %5 {
      %c0_12 = arith.constant 0 : index
      %c0_13 = arith.constant 0 : index
      %15 = vector.load %arg3[%c0_12, %c0_13] : memref<2x32xbf16, #tpu.memory_space<vmem>>, vector<2x32xbf16>
      %16 = arith.extf %15 : vector<2x32xbf16> to vector<2x32xf32>
      %cst_14 = arith.constant dense<0.000000e+00> : vector<2xf32>
      %17 = vector.multi_reduction <add>, %16, %cst_14 [1] : vector<2x32xf32> to vector<2xf32>
      %18 = vector.shape_cast %17 : vector<2xf32> to vector<2x1xf32>
      %cst_15 = arith.constant 3.125000e-02 : f32
      %19 = vector.broadcast %cst_15 : f32 to vector<2x1xf32>
      %20 = arith.mulf %18, %19 : vector<2x1xf32>
      %21 = arith.mulf %16, %16 : vector<2x32xf32>
      %cst_16 = arith.constant dense<0.000000e+00> : vector<2xf32>
      %22 = vector.multi_reduction <add>, %21, %cst_16 [1] : vector<2x32xf32> to vector<2xf32>
      %23 = vector.shape_cast %22 : vector<2xf32> to vector<2x1xf32>
      %cst_17 = arith.constant 3.125000e-02 : f32
      %24 = vector.broadcast %cst_17 : f32 to vector<2x1xf32>
      %25 = arith.mulf %23, %24 : vector<2x1xf32>
      %26 = arith.mulf %20, %20 : vector<2x1xf32>
      %27 = arith.subf %25, %26 : vector<2x1xf32>
      %cst_18 = arith.constant 0.000000e+00 : f32
      %28 = vector.broadcast %cst_18 : f32 to vector<2x1xf32>
      %29 = arith.maximumf %27, %28 : vector<2x1xf32>
      %30 = vector.broadcast %20 : vector<2x1xf32> to vector<2x32xf32>
      %31 = arith.subf %16, %30 : vector<2x32xf32>
      %cst_19 = arith.constant 9.99999997E-7 : f32
      %32 = vector.broadcast %cst_19 : f32 to vector<2x1xf32>
      %33 = arith.addf %29, %32 : vector<2x1xf32>
      %34 = math.rsqrt %33 : vector<2x1xf32>
      %35 = vector.broadcast %34 : vector<2x1xf32> to vector<2x32xf32>
      %36 = arith.mulf %31, %35 : vector<2x32xf32>
      %c0_20 = arith.constant 0 : index
      %c0_21 = arith.constant 0 : index
      %37 = vector.load %arg6[%c0_20, %c0_21] : memref<1x32xf32, #tpu.memory_space<vmem>>, vector<1x32xf32>
      %38 = vector.broadcast %37 : vector<1x32xf32> to vector<2x32xf32>
      %39 = arith.mulf %36, %38 : vector<2x32xf32>
      %c0_22 = arith.constant 0 : index
      %c0_23 = arith.constant 0 : index
      %40 = vector.load %arg7[%c0_22, %c0_23] : memref<1x32xf32, #tpu.memory_space<vmem>>, vector<1x32xf32>
      %41 = vector.broadcast %40 : vector<1x32xf32> to vector<2x32xf32>
      %42 = arith.addf %39, %41 : vector<2x32xf32>
      %43 = arith.truncf %42 : vector<2x32xf32> to vector<2x32xbf16>
      %c0_24 = arith.constant 0 : index
      %c0_25 = arith.constant 0 : index
      %44 = vector.load %arg10[%c0_24, %c0_25] : memref<2x32xbf16, #tpu.memory_space<vmem>>, vector<2x32xbf16>
      tpu.vector_store %arg10[%c0_24, %c0_25], %43 {strides = array<i32>} : memref<2x32xbf16, #tpu.memory_space<vmem>>, vector<2x32xbf16>,
    } else {
    }
    %c0 = arith.constant 0 : index
    %c0_3 = arith.constant 0 : index
    %6 = vector.load %arg10[%c0, %c0_3] : memref<2x32xbf16, #tpu.memory_space<vmem>>, vector<2x32xbf16>
    %c0_4 = arith.constant 0 : index
    %c0_5 = arith.constant 0 : index
    %7 = vector.load %arg9[%c0_4, %c0_5] : memref<2x10xf32, #tpu.memory_space<vmem>>, vector<2x10xf32>
    %c0_6 = arith.constant 0 : index
    %c0_7 = arith.constant 0 : index
    %8 = vector.load %arg4[%c0_6, %c0_7] : memref<32x10xbf16, #tpu.memory_space<vmem>>, vector<32x10xbf16>
    %cst = arith.constant dense<0.000000e+00> : vector<2x10xf32>
    %9 = tpu.matmul %6, %8, %cst {dimension_numbers = #tpu.dot_dimension_numbers<[1], [0], [0], [1], [0, 0, 1, 1], [], []>} : vector<2x32xbf16>, vector<32x10xbf16>, vector<2x10xf32> -> vector<2x10xf32>
    %10 = arith.addf %7, %9 : vector<2x10xf32>
    %c0_8 = arith.constant 0 : index
    %c0_9 = arith.constant 0 : index
    %11 = vector.load %arg9[%c0_8, %c0_9] : memref<2x10xf32, #tpu.memory_space<vmem>>, vector<2x10xf32>
    tpu.vector_store %arg9[%c0_8, %c0_9], %10 {strides = array<i32>} : memref<2x10xf32, #tpu.memory_space<vmem>>, vector<2x10xf32>,
    %c0_i32_10 = arith.constant 0 : i32
    %12 = arith.cmpi eq, %arg2, %c0_i32_10 : i32
    %13 = arith.extui %12 : i1 to i32
    %c0_i32_11 = arith.constant 0 : i32
    %14 = arith.cmpi ne, %13, %c0_i32_11 : i32
    scf.if %14 {
      %c0_12 = arith.constant 0 : index
      %c0_13 = arith.constant 0 : index
      %15 = vector.load %arg9[%c0_12, %c0_13] : memref<2x10xf32, #tpu.memory_space<vmem>>, vector<2x10xf32>
      %c0_14 = arith.constant 0 : index
      %c0_15 = arith.constant 0 : index
      %16 = vector.load %arg5[%c0_14, %c0_15] : memref<1x10xf32, #tpu.memory_space<vmem>>, vector<1x10xf32>
      %17 = vector.broadcast %16 : vector<1x10xf32> to vector<2x10xf32>
      %18 = arith.addf %15, %17 : vector<2x10xf32>
      %c0_16 = arith.constant 0 : index
      %c0_17 = arith.constant 0 : index
      %19 = vector.load %arg8[%c0_16, %c0_17] : memref<2x10xf32, #tpu.memory_space<vmem>>, vector<2x10xf32>
      tpu.vector_store %arg8[%c0_16, %c0_17], %18 {strides = array<i32>} : memref<2x10xf32, #tpu.memory_space<vmem>>, vector<2x10xf32>,
    } else {
    }
    return
  }
  func.func @transform_0(%arg0: i32, %arg1: i32, %arg2: i32) -> (i32, i32) {
    %c0_i32 = arith.constant 0 : i32
    return %arg0, %arg2 : i32, i32
  }
  func.func @transform_1(%arg0: i32, %arg1: i32, %arg2: i32) -> (i32, i32) {
    %c0_i32 = arith.constant 0 : i32
    return %arg2, %arg1 : i32, i32
  }
  func.func @transform_2(%arg0: i32, %arg1: i32, %arg2: i32) -> (i32, i32) {
    %c0_i32 = arith.constant 0 : i32
    %c0_i32_0 = arith.constant 0 : i32
    return %c0_i32, %arg1 : i32, i32
  }
  func.func @transform_3(%arg0: i32, %arg1: i32, %arg2: i32) -> (i32, i32) {
    %c0_i32 = arith.constant 0 : i32
    %c0_i32_0 = arith.constant 0 : i32
    return %c0_i32, %arg2 : i32, i32
  }
  func.func @transform_4(%arg0: i32, %arg1: i32, %arg2: i32) -> (i32, i32) {
    %c0_i32 = arith.constant 0 : i32
    %c0_i32_0 = arith.constant 0 : i32
    return %c0_i32, %arg2 : i32, i32
  }
  func.func @transform_5(%arg0: i32, %arg1: i32, %arg2: i32) -> (i32, i32) {
    %c0_i32 = arith.constant 0 : i32
    return %arg0, %arg1 : i32, i32
  }
}

</mosaic_0001>

<bundles_post_ra>
// kernel: vit_forward.15
= control target key start
LH: loop header
LB: loop body
LE: loop exit
PB: predicated region body
PF: predicated region fallthrough
CT: control target
= control target key end

     0   :  { %vm22_vm0 = vcmask 261120   ;;  %v162_v0 = vmov 0.0   ;;  %vm163_vm1 = vmmov 0   ;;  %vm24_vm2 = vcmask 254976   ;;  %s216_s1 = inlined_call_operand.vmem [shape: bf16[32,32], index: 1, kind: input, shape index: {}]   ;;  %s217_s0 = inlined_call_operand.vmem [shape: bf16[10,32], index: 0, kind: input, shape index: {}]   ;;  %s218_s3 = inlined_call_operand.vmem [shape: bf16[10,32], index: 3, kind: input, shape index: {}]   ;;  %s219_s2 = inlined_call_operand.vmem [shape: f32[1,32], index: 2, kind: input, shape index: {}]   ;;  %s220_s4 = inlined_call_operand.vmem [shape: bf16[10,32], index: 4, kind: output, shape index: {}]  }
   0x1   :  { %149 = vmatprep.subr.bf16.mxu0 %v162_v0  ;;  %v159_v1 = vld [vmem:[%s216_s1] sm:$0xff]   ;;  %153 = vmatprep.mubr.msk.bf16.mxu0 %vm163_vm1, %v162_v0  ;;  %23 = vst.msk [vmem:[#allocation2] sm:$0xff] %vm22_vm0, %v162_v0  ;;  %v160_v2 = vld [vmem:[%s216_s1 + $0x8] sm:$0xff]   ;;  %vm129_vm3 = vcmask 257024   ;;  %vm131_vm4 = vcmask 253952  }
   0x2   :  { %150 = vmatpush3.bf16.msra.mxu0 %v159_v1  ;;  %v161_v3 = vld [vmem:[%s217_s0] sm:$0x1f]   ;;  %25 = vst.msk [vmem:[#allocation2 + $0x8] sm:$0x3] %vm24_vm2, %v162_v0 }
   0x3   :  { %151 = vmatprep.subr.bf16.mxu0 %v162_v0  ;;  %v115_v12 = vld [vmem:[%s218_s3] sm:$0xf]  ;;  %v116_v14 = vld [vmem:[%s218_s3 + $0x4] sm:$0x1] }
   0x4   :  { %v141_v13 = vld [vmem:[%s219_s2] ss:$0 sm:$0xff]  ;;  %v117_v15 = vunpack.c.l.bf16 %v115_v12  ;;  %v118_v18 = vunpack.c.l.bf16 %v116_v14 }
   0x6   :  { %152 = vmatpush3.bf16.msra.mxu0 %v160_v2 }
   0x8   :  { %v28_v4 = vld [vmem:[#allocation2] sm:$0xff] }
   0x9   :  { %154 = vmatmul.mubr.msk.bf16.vlgmr.msra.gmra.mrb[0].mxu0 %vm22_vm0, %v161_v3  ;;  %v29_v6 = vld [vmem:[#allocation2 + $0x8] sm:$0x3] }
  0xdc   :  { %v89_v5 = vpop.f32.mrb[0].mxu0 }
  0xdd   :  { %v96_v7 = vadd.f32 %v89_v5, %v28_v4  ;;  %v155_v8 = vpop.f32.mrb[1].mxu0 }
  0xde   :  { %v92_v9 = vpop.f32.mrb[2].mxu0 }
  0xdf   :  { %98 = vst.msk [vmem:[#allocation2] sm:$0xff] %vm22_vm0, %v96_v7  ;;  %v97_v10 = vadd.f32 %v92_v9, %v29_v6  ;;  %v156_v11 = vpop.f32.mrb[3].mxu0 }
  0xe1   :  { %100 = vst.msk [vmem:[#allocation2 + $0x8] sm:$0x3] %vm24_vm2, %v97_v10 }
  0xe6   :  { %v104_v16 = vld [vmem:[#allocation2] sm:$0xff] }
  0xe7   :  { %v113_v17 = vadd.f32 %v141_v13, %v104_v16 }
  0xe8   :  { %v105_v19 = vld [vmem:[#allocation2 + $0x8] sm:$0x3] }
  0xe9   :  { %v119_v20 = vadd.f32 %v117_v15, %v113_v17  ;;  %v114_v21 = vadd.f32 %v141_v13, %v105_v19 }
  0xeb   :  { %v144_v22 = vpack.c.bf16 %v119_v20, %v119_v20  ;;  %v120_v23 = vadd.f32 %v118_v18, %v114_v21 }
  0xed   :  { %130 = vst.msk [vmem:[%s220_s4] sm:$0xf] %vm129_vm3, %v144_v22  ;;  %v145_v24 = vpack.c.bf16 %v120_v23, %v120_v23 }
  0xef   :  { %132 = vst.msk [vmem:[%s220_s4 + $0x4] sm:$0x1] %vm131_vm4, %v145_v24 }

// kernel: vit_forward.12
= control target key start
LH: loop header
LB: loop body
LE: loop exit
PB: predicated region body
PF: predicated region fallthrough
CT: control target
= control target key end

     0   :  { %vm19_vm0 = vcmask 261120   ;;  %v280_v19 = vmov 0.0   ;;  %vm214_vm1 = vcmask 257024   ;;  %s358_s1 = inlined_call_operand.vmem [shape: bf16[256,32], index: 1, kind: input, shape index: {}]   ;;  %s359_s0 = inlined_call_operand.vmem [shape: bf16[8,256], index: 0, kind: input, shape index: {}]   ;;  %s360_s2 = inlined_call_operand.vmem [shape: f32[1,32], index: 2, kind: input, shape index: {}]   ;;  %s361_s3 = inlined_call_operand.vmem [shape: bf16[8,32], index: 3, kind: output, shape index: {}]  }
   0x1   :  { %v262_v0 = vld [vmem:[%s358_s1 + $0x40] sm:$0xff]   ;;  %v264_v2 = vld [vmem:[%s358_s1 + $0x48] sm:$0xff]   ;;  %v266_v4 = vld [vmem:[%s358_s1 + $0x50] sm:$0xff]   ;;  %20 = vst.msk [vmem:[#allocation2] sm:$0xff] %vm19_vm0, %v280_v19 }
   0x2   :  { %v263_v1 = vld [vmem:[%s358_s1] sm:$0xff]   ;;  %239 = vmatprep.subr.bf16.mxu0 %v262_v0  ;;  %v265_v3 = vld [vmem:[%s358_s1 + $0x8] sm:$0xff]   ;;  %v267_v5 = vld [vmem:[%s358_s1 + $0x10] sm:$0xff]  }
   0x3   :  { %240 = vmatpush3.bf16.msra.mxu0 %v263_v1  ;;  %v268_v6 = vld [vmem:[%s358_s1 + $0x58] sm:$0xff]   ;;  %v270_v8 = vld [vmem:[%s358_s1 + $0x60] sm:$0xff]   ;;  %v272_v10 = vld [vmem:[%s358_s1 + $0x68] sm:$0xff]  }
   0x4   :  { %241 = vmatprep.subr.bf16.mxu0 %v264_v2  ;;  %v269_v7 = vld [vmem:[%s358_s1 + $0x18] sm:$0xff]   ;;  %v271_v9 = vld [vmem:[%s358_s1 + $0x20] sm:$0xff]   ;;  %v273_v13 = vld [vmem:[%s358_s1 + $0x28] sm:$0xff]  }
   0x5   :  { %v21_v11 = vld [vmem:[%s359_s0] sm:$0xff]  ;;  %v274_v14 = vld [vmem:[%s358_s1 + $0x70] sm:$0xff]   ;;  %v276_v16 = vld [vmem:[%s358_s1 + $0x78] sm:$0xff]  }
   0x6   :  { %v221_v12 = vcombine.high %v21_v11, %v21_v11  ;;  %v275_v15 = vld [vmem:[%s358_s1 + $0x30] sm:$0xff]   ;;  %v277_v17 = vld [vmem:[%s358_s1 + $0x38] sm:$0xff]   ;;  %v220_v18 = vcombine.low %v21_v11, %v21_v11  ;;  %v238_v27 = vld [vmem:[%s360_s2] ss:$0 sm:$0xff] }
   0x7   :  { %242 = vmatpush3.bf16.msra.mxu0 %v265_v3 }
   0x8   :  { %243 = vmatprep.subr.bf16.mxu0 %v266_v4  ;;  %190 = vmatprep.mubr.bf16.mxu0 %v221_v12  ;;  %v22_v21 = vld [vmem:[#allocation2] sm:$0xff] }
   0xb   :  { %244 = vmatpush3.bf16.msra.mxu0 %v267_v5 }
   0xc   :  { %245 = vmatprep.subr.bf16.mxu0 %v268_v6 }
   0xf   :  { %246 = vmatpush3.bf16.msra.mxu0 %v269_v7 }
  0x10   :  { %247 = vmatprep.subr.bf16.mxu0 %v270_v8 }
  0x13   :  { %248 = vmatpush3.bf16.msra.mxu0 %v271_v9 }
  0x14   :  { %249 = vmatprep.subr.bf16.mxu0 %v272_v10 }
  0x17   :  { %250 = vmatpush3.bf16.msra.mxu0 %v273_v13 }
  0x18   :  { %251 = vmatprep.subr.bf16.mxu0 %v274_v14 }
  0x1b   :  { %252 = vmatpush3.bf16.msra.mxu0 %v275_v15 }
  0x1c   :  { %253 = vmatprep.subr.bf16.mxu0 %v276_v16 }
  0x1f   :  { %254 = vmatpush3.bf16.msra.mxu0 %v277_v17 }
  0x22   :  { %191 = vmatmul.mubr.bf16.vlgmr.msra.gmra.mrb[0].mxu0 %v220_v18 }
  0xf5   :  { %v255_v20 = vpop.f32.mrb[0].mxu0 }
  0xf6   :  { %v256_v22 = vpop.f32.mrb[1].mxu0 }
  0xf7   :  { %v257_v23 = vadd.f32 %v256_v22, %v255_v20  ;;  %v258_v24 = vpop.f32.mrb[2].mxu0 }
  0xf8   :  { %v259_v25 = vpop.f32.mrb[3].mxu0 }
  0xf9   :  { %v198_v26 = vadd.f32 %v257_v23, %v22_v21 }
  0xfb   :  { %200 = vst.msk [vmem:[#allocation2] sm:$0xff] %vm19_vm0, %v198_v26 }
 0x102   :  { %v204_v28 = vld [vmem:[#allocation2] sm:$0xff] }
 0x103   :  { %v212_v29 = vadd.f32 %v238_v27, %v204_v28 }
 0x105   :  { %v213_v30 = vpack.c.bf16 %v212_v29, %v212_v29 }
 0x107   :  { %215 = vst.msk [vmem:[%s361_s3] sm:$0xf] %vm214_vm1, %v213_v30 }

// kernel: vit_forward.13
= control target key start
LH: loop header
LB: loop body
LE: loop exit
PB: predicated region body
PF: predicated region fallthrough
CT: control target
= control target key end

     0   :  { %vm37_vm0 = vcmask 261120   ;;  %vm41_vm1 = vcmask 254976   ;;  %v242_v11 = vmov 0.0   ;;  %vm243_vm2 = vmmov 0   ;;  %s306_s0 = inlined_call_operand.vmem [shape: bf16[10,32], index: 0, kind: input, shape index: {}]   ;;  %s307_s1 = inlined_call_operand.vmem [shape: bf16[32,96], index: 1, kind: input, shape index: {}]   ;;  %s308_s3 = inlined_call_operand.vmem [shape: f32[1,32], index: 3, kind: input, shape index: {}]   ;;  %s309_s4 = inlined_call_operand.vmem [shape: f32[1,32], index: 4, kind: input, shape index: {}]   ;;  %s310_s2 = inlined_call_operand.vmem [shape: f32[1,96], index: 2, kind: input, shape index: {}]   ;;  %s311_s5 = inlined_call_operand.vmem [shape: bf16[10,96], index: 5, kind: output, shape index: {}]  }
   0x1   :  { %v33_v0 = vld [vmem:[%s306_s0] sm:$0xf]  ;;  %v34_v1 = vld [vmem:[%s306_s0 + $0x4] sm:$0x1]  ;;  %225 = vmatprep.subr.bf16.mxu0 %v242_v11  ;;  %v236_v12 = vld [vmem:[%s307_s1 + $0x8] sm:$0xff]   ;;  %229 = vmatprep.mubr.msk.bf16.mxu0 %vm243_vm2, %v242_v11  ;;  %vm25_vm3 = vcmask 785408  }
   0x2   :  { %v35_v2 = vunpack.c.l.bf16 %v33_v0  ;;  %v36_v3 = vunpack.c.l.bf16 %v34_v1  ;;  %v235_v10 = vld [vmem:[%s307_s1] sm:$0xff]   ;;  %26 = vst.msk [vmem:[#allocation2] sm:$0xff] %vm25_vm3, %v242_v11  ;;  %vm97_vm4 = vcmask 257024   ;;  %vm99_vm5 = vcmask 253952  }
   0x3   :  { %226 = vmatpush3.bf16.msra.mxu0 %v235_v10  ;;  %v207_v31 = vld [vmem:[%s308_s3] ss:$0 sm:$0xff]  ;;  %vm27_vm6 = vcmask 779264   ;;  %vm199_vm7 = vcmask 781312   ;;  %vm201_vm8 = vcmask 778240  }
   0x4   :  { %v38_v4 = vsel %vm37_vm0, %v35_v2, 0.0  ;;  %v47_v5 = vmul.f32 %v35_v2, %v35_v2  ;;  %v48_v6 = vmul.f32 %v36_v3, %v36_v3  ;;  %v42_v8 = vsel %vm41_vm1, %v36_v3, 0.0  ;;  %227 = vmatprep.subr.bf16.mxu0 %v242_v11  ;;  %v208_v33 = vld [vmem:[%s309_s4] ss:$0 sm:$0xff]  ;;  %28 = vst.msk [vmem:[#allocation2 + $0x8] sm:$0x3] %vm27_vm6, %v242_v11 }
   0x5   :  { %39 = vadd.xlane.f32.xlu0 %v38_v4  ;;  %v215_v52 = vld [vmem:[%s310_s2] ss:$0 sm:$0xff] }
   0x6   :  { %v49_v7 = vsel %vm37_vm0, %v47_v5, 0.0  ;;  %v52_v9 = vsel %vm41_vm1, %v48_v6, 0.0 }
   0x7   :  { %50 = vadd.xlane.f32.xlu1 %v49_v7  ;;  %228 = vmatpush3.bf16.msra.mxu0 %v236_v12 }
   0x9   :  { %43 = vadd.xlane.f32.xlu0 %v42_v8  ;;  %v103_v44 = vld [vmem:[#allocation2] sm:$0xff] }
   0xb   :  { %53 = vadd.xlane.f32.xlu1 %v52_v9  ;;  %v104_v46 = vld [vmem:[#allocation2 + $0x8] sm:$0x3] }
  0x92   :  { %v40_v13 = vpop.xlane.xlu0 %39 }
  0x93   :  { %v45_v14 = vmul.f32 0.03125, %v40_v13 }
  0x94   :  { %v51_v15 = vpop.xlane.xlu1 %50 }
  0x95   :  { %v57_v16 = vmul.f32 %v45_v14, %v45_v14  ;;  %v55_v17 = vmul.f32 0.03125, %v51_v15  ;;  %v63_v29 = vsub.f32 %v35_v2, %v45_v14 }
  0x96   :  { %v44_v18 = vpop.xlane.xlu0 %43 }
  0x97   :  { %v59_v19 = vsub.f32 %v55_v17, %v57_v16  ;;  %v46_v20 = vmul.f32 0.03125, %v44_v18 }
  0x98   :  { %v54_v21 = vpop.xlane.xlu1 %53 }
  0x99   :  { %v61_v22 = vmax.f32 %v59_v19, 0.0  ;;  %v58_v23 = vmul.f32 %v46_v20, %v46_v20  ;;  %v56_v24 = vmul.f32 0.03125, %v54_v21  ;;  %v64_v35 = vsub.f32 %v36_v3, %v46_v20 }
  0x9b   :  { %v65_v25 = vadd.f32 1e-06, %v61_v22  ;;  %v60_v26 = vsub.f32 %v56_v24, %v58_v23 }
  0x9d   :  { %238 = vrsqrt.f32 %v65_v25  ;;  %v62_v27 = vmax.f32 %v60_v26, 0.0 }
  0x9f   :  { %v66_v28 = vadd.f32 1e-06, %v62_v27 }
  0xa1   :  { %240 = vrsqrt.f32 %v66_v28 }
  0xa7   :  { %v239_v30 = vpop.eup %238 }
  0xa8   :  { %v69_v32 = vmul.f32 %v239_v30, %v63_v29 }
  0xaa   :  { %v78_v34 = vmul.f32 %v207_v31, %v69_v32 }
  0xab   :  { %v241_v36 = vpop.eup %240 }
  0xac   :  { %v87_v37 = vadd.f32 %v208_v33, %v78_v34  ;;  %v70_v38 = vmul.f32 %v241_v36, %v64_v35 }
  0xae   :  { %v218_v39 = vpack.c.bf16 %v87_v37, %v87_v37  ;;  %v79_v40 = vmul.f32 %v207_v31, %v70_v38 }
  0xb0   :  { %98 = vst.msk [vmem:[#allocation3] sm:$0xf] %vm97_vm4, %v218_v39  ;;  %v88_v41 = vadd.f32 %v208_v33, %v79_v40 }
  0xb2   :  { %v219_v42 = vpack.c.bf16 %v88_v41, %v88_v41 }
  0xb4   :  { %100 = vst.msk [vmem:[#allocation3 + $0x4] sm:$0x1] %vm99_vm5, %v219_v42 }
  0xbb   :  { %v237_v43 = vld [vmem:[#allocation3] sm:$0x1f]  }
  0xbc   :  { %230 = vmatmul.mubr.msk.bf16.vlgmr.msra.gmra.mrb[0].mxu0 %vm37_vm0, %v237_v43 }
 0x18f   :  { %v164_v45 = vpop.f32.mrb[0].mxu0 }
 0x190   :  { %v171_v47 = vadd.f32 %v164_v45, %v103_v44  ;;  %v231_v48 = vpop.f32.mrb[1].mxu0 }
 0x191   :  { %v167_v49 = vpop.f32.mrb[2].mxu0 }
 0x192   :  { %174 = vst.msk [vmem:[#allocation2] sm:$0xff] %vm25_vm3, %v171_v47  ;;  %v172_v50 = vadd.f32 %v167_v49, %v104_v46  ;;  %v232_v51 = vpop.f32.mrb[3].mxu0 }
 0x194   :  { %176 = vst.msk [vmem:[#allocation2 + $0x8] sm:$0x3] %vm27_vm6, %v172_v50 }
 0x199   :  { %v180_v53 = vld [vmem:[#allocation2] sm:$0xff] }
 0x19a   :  { %v189_v54 = vadd.f32 %v215_v52, %v180_v53 }
 0x19b   :  { %v181_v55 = vld [vmem:[#allocation2 + $0x8] sm:$0x3] }
 0x19c   :  { %v220_v56 = vpack.c.bf16 %v189_v54, %v189_v54  ;;  %v190_v57 = vadd.f32 %v215_v52, %v181_v55 }
 0x19e   :  { %200 = vst.msk [vmem:[%s311_s5] sm:$0xf] %vm199_vm7, %v220_v56  ;;  %v221_v58 = vpack.c.bf16 %v190_v57, %v190_v57 }
 0x1a0   :  { %202 = vst.msk [vmem:[%s311_s5 + $0x4] sm:$0x1] %vm201_vm8, %v221_v58 }

// kernel: vit_forward.14
= control target key start
LH: loop header
LB: loop body
LE: loop exit
PB: predicated region body
PF: predicated region fallthrough
CT: control target
= control target key end

     0   :  { %s590_s6 = smov 0   ;;  %s592_s7 = smov 0   ;;  %s652_s0 = inlined_call_operand.vmem [shape: bf16[2,5,96], index: 0, kind: input, shape index: {}]   ;;  %s653_s1 = inlined_call_operand.vmem [shape: bf16[2,5,32], index: 1, kind: output, shape index: {}]  }
   0x1   :  { %s594_s8 = smov 0  }
   0x2 LB: > { %s23_s9 = sadd.s32 1, %s565_s7  ;;  %p463_p0 = scmp.ge.s32.totalorder %s569_s8, 1  ;;  %s569_s8 = sphi %s594_s8, %s11_s8   ;;  %s565_s7 = sphi %s592_s7, %s655_s7   ;;  %s561_s6 = sphi %s590_s6, %s654_s6  }
   0x3   : > { %p25_p1 = scmp.ge.s32.totalorder %s23_s9, 2  ;;  %p105_p2 = scmp.lt.s32.totalorder %s569_s8, 3 }
   0x5   : > { %s657_s9 = smov (%p25_p1, %s23_s9), 0  ;;  %p106_p3 = pnand %p463_p0, %p105_p2 }
   0x6   : > { %p129_p4 = scmp.lt.s32.totalorder (!%p106_p3), %s561_s6, 1  ;;  %v571_v0 = vmov (!%p106_p3), 0.0   ;;  %vm572_vm0 = vmmov (!%p106_p3), 0   ;;  %s573_s14 = smov (!%p106_p3), 96   ;;  %vm150_vm1 = vcmask (!%p106_p3), 130048   ;;  %vm197_vm2 = vcmask (!%p106_p3), 36864  }
   0x7   : > { %109 = sbr.rel (%p106_p3) target bundleno = 1539 (0x603), region = 24  ;;  %481 = vmatprep.subr.bf16.mxu0 (!%p106_p3), %v571_v0  ;;  %483 = vmatprep.mubr.msk.bf16.mxu0 (!%p106_p3), %vm572_vm0, %v571_v0  ;;  %s574_s15 = smov (!%p106_p3), 64   ;;  %vm216_vm3 = vcmask (!%p106_p3), 1041408   ;;  %vm217_vm4 = vcmask (!%p106_p3), 1042432   ;;  %v575_v11 = vmov (!%p106_p3), 65535   ;;  %vm212_vm5 = vcmask (!%p106_p3), 39936  }
   0x8   : > { %487 = vmatprep.subr.bf16.mxu1 (!%p106_p3), %v571_v0  ;;  %489 = vmatprep.mubr.msk.bf16.mxu1 (!%p106_p3), %vm572_vm0, %v571_v0  ;;  %v218_v12 = vsel (!%p106_p3), %vm216_vm3, 4294967295, %v575_v11  ;;  %s576_s16 = smov (!%p106_p3), 80   ;;  %s577_s17 = smov (!%p106_p3), 112   ;;  %vm379_vm6 = vcmask (!%p106_p3), 256000   ;;  %vm380_vm7 = vsmask.f32 (!%p106_p3), 2304 }
   0x9   : > { %v219_v13 = vsel (!%p106_p3), %vm217_vm4, %v218_v12, 0  ;;  %s578_s18 = smov (!%p106_p3), 48   ;;  %s579_s19 = smov (!%p106_p3), 16   ;;  %vm381_vm8 = vmand (!%p106_p3), %vm379_vm6, %vm380_vm7 }
   0xe   : > { %s659_s6 = smov (!%p129_p4, %s561_s6), 1 }
   0xf   : > { %s464_s10 = sshll.u32 %s659_s6, 2 }
  0x10   : > { %s135_s13 = scalar_lea.vmem %s652_s0, %s464_s10  ;;  %s142_s22 = scalar_lea.vmem %s653_s1, %s464_s10 }
  0x11   : > { %v144_v1 = vld [vmem:[%s135_s13] sm:$0x7] }
  0x12   : > { %v618_v2 = vcombine.low %v144_v1, %v144_v1  ;;  %v382_v52 = vld [vmem:[%s142_s22] sm:$0x7] }
  0x14   : > { %148 = vrot.lane.b32.xlu0 %v618_v2, %s573_s14  ;;  %210 = vrot.lane.b32.xlu1 %v618_v2, %s574_s15 }
  0x86   : > { %v149_v3 = vpop.permute.xlu0 %148  ;;  %v211_v10 = vpop.permute.xlu1 %210 }
  0x87   : > { %v155_v4 = vsel %vm150_vm1, %v149_v3, 0  ;;  %v221_v14 = vand.u32 %v219_v13, %v211_v10 }
  0x88   : > { %482 = vmatpush3.bf16.xpose.msra.mxu0 %v155_v4 }
  0x89   : > { %499 = vmatprep.subr.bf16.mxu0 %v571_v0  ;;  %488 = vmatpush3.bf16.msra.mxu1 %v221_v14 }
  0x8a   : > { %493 = vmatprep.subr.bf16.mxu1 %v571_v0 }
  0x8f   : > { %484 = vmatmul.mubr.msk.bf16.vlgmr.msra.gmra.mrb[0].mxu0 %vm150_vm1, %v144_v1 }
  0x90   : > { %501 = vmatprep.mubr.msk.bf16.mxu0 %vm572_vm0, %v571_v0 }
 0x162   : > { %v191_v5 = vpop.f32.mrb[0].mxu0 }
 0x163   : > { %v485_v6 = vpop.f32.mrb[1].mxu0  ;;  %v198_v7 = vsel %vm197_vm2, %v191_v5, -inf }
 0x164   : > { %199 = vmax.xlane.f32.xlu0 %v198_v7  ;;  %v194_v8 = vpop.f32.mrb[2].mxu0 }
 0x165   : > { %v486_v9 = vpop.f32.mrb[3].mxu0 }
 0x1f1   : > { %v200_v15 = vpop.xlane.xlu0 %199 }
 0x1f2   : > { %v201_v16 = vsub.f32 %v191_v5, %v200_v15 }
 0x1f4   : > { %v202_v17 = vmul.f32 1.442695, %v201_v16 }
 0x1f6   : > { %539 = vpow2.f32 %v202_v17 }
 0x200   : > { %v540_v18 = vpop.eup %539 }
 0x201   : > { %v204_v19 = vsel %vm197_vm2, %v540_v18, 0.0 }
 0x202   : > { %205 = vadd.xlane.f32.xlu1 %v204_v19 }
 0x213   : > { %265 = vrot.lane.b32.xlu1 %v618_v2, %s576_s16 }
 0x217   : > { %263 = vrot.lane.b32.xlu1 %v618_v2, %s577_s17 }
 0x28f   : > { %v206_v20 = vpop.xlane.xlu1 %205 }
 0x290   : > { %541 = vrcp.f32 %v206_v20 }
 0x293   : > { %v266_v22 = vpop.permute.xlu1 %265 }
 0x294   : > { %v271_v24 = vsel %vm150_vm1, %v266_v22, 0 }
 0x297   : > { %v264_v26 = vpop.permute.xlu1 %263 }
 0x29a   : > { %v542_v21 = vpop.eup %541 }
 0x29b   : > { %v208_v23 = vmul.f32 %v542_v21, %v540_v18 }
 0x29d   : > { %v209_v25 = vpack.c.bf16 %v208_v23, %v208_v23 }
 0x29f   : > { %490 = vmatmul.mubr.msk.bf16.vlgmr.msra.gmra.mrb[0].mxu1 %vm212_vm5, %v209_v25 }
 0x2a0   : > { %494 = vmatpush3.bf16.xpose.msra.mxu1 %v271_v24  ;;  %495 = vmatprep.mubr.msk.bf16.mxu1 %vm572_vm0, %v571_v0 }
 0x2a7   : > { %496 = vmatmul.mubr.msk.bf16.vlgmr.msra.gmra.mrb[4].mxu1 %vm150_vm1, %v264_v26 }
 0x372   : > { %v257_v27 = vpop.f32.mrb[0].mxu1 }
 0x373   : > { %v491_v28 = vpop.f32.mrb[1].mxu1 }
 0x374   : > { %v260_v29 = vpop.f32.mrb[2].mxu1 }
 0x375   : > { %v492_v30 = vpop.f32.mrb[3].mxu1 }
 0x37a   : > { %v307_v31 = vpop.f32.mrb[4].mxu1 }
 0x37b   : > { %v497_v32 = vpop.f32.mrb[5].mxu1  ;;  %v313_v33 = vsel %vm197_vm2, %v307_v31, -inf }
 0x37c   : > { %314 = vmax.xlane.f32.xlu1 %v313_v33  ;;  %v310_v34 = vpop.f32.mrb[6].mxu1 }
 0x37d   : > { %v498_v35 = vpop.f32.mrb[7].mxu1 }
 0x409   : > { %v315_v36 = vpop.xlane.xlu1 %314 }
 0x40a   : > { %v316_v37 = vsub.f32 %v307_v31, %v315_v36 }
 0x40c   : > { %v317_v38 = vmul.f32 1.442695, %v316_v37 }
 0x40e   : > { %543 = vpow2.f32 %v317_v38 }
 0x418   : > { %v544_v39 = vpop.eup %543 }
 0x419   : > { %v319_v40 = vsel %vm197_vm2, %v544_v39, 0.0 }
 0x41a   : > { %320 = vadd.xlane.f32.xlu0 %v319_v40 }
 0x430   : > { %325 = vrot.lane.b32.xlu0 %v618_v2, %s578_s18 }
 0x4a7   : > { %v321_v41 = vpop.xlane.xlu0 %320 }
 0x4a8   : > { %545 = vrcp.f32 %v321_v41 }
 0x4ab   : > { %v326_v42 = vpop.permute.xlu0 %325 }
 0x4ac   : > { %v331_v43 = vand.u32 %v326_v42, %v219_v13 }
 0x4ae   : > { %500 = vmatpush3.bf16.msra.mxu0 %v331_v43 }
 0x4b2   : > { %v546_v44 = vpop.eup %545 }
 0x4b3   : > { %v323_v45 = vmul.f32 %v546_v44, %v544_v39 }
 0x4b5   : > { %v324_v46 = vpack.c.bf16 %v323_v45, %v323_v45 }
 0x4b7   : > { %502 = vmatmul.mubr.msk.bf16.vlgmr.msra.gmra.mrb[4].mxu0 %vm212_vm5, %v324_v46 }
 0x58a   : > { %v367_v47 = vpop.f32.mrb[4].mxu0 }
 0x58b   : > { %374 = vrot.lane.b32.xlu0 %v367_v47, %s579_s19  ;;  %v503_v48 = vpop.f32.mrb[5].mxu0 }
 0x58c   : > { %v370_v49 = vpop.f32.mrb[6].mxu0 }
 0x58d   : > { %v504_v50 = vpop.f32.mrb[7].mxu0 }
 0x5fd   : > { %v375_v51 = vpop.permute.xlu0 %374 }
 0x5fe   : > { %v377_v53 = vsel %vm150_vm1, %v257_v27, %v375_v51 }
 0x5ff   : > { %v378_v54 = vpack.c.bf16 %v377_v53, %v377_v53 }
 0x601   : > { %v383_v55 = vsel %vm381_vm8, %v378_v54, %v382_v52 }
 0x602   : > { %384 = vst [vmem:[%s142_s22] sm:$0x7] %v383_v55 }
 0x603 PF: > { %s11_s8 = sadd.s32 1, %s569_s8   ;;  %s654_s6 = smov %s565_s7 }
 0x604   : > { %p8_p5 = scmp.ge.s32.totalorder %s11_s8, 4   ;;  %s655_s7 = smov %s657_s9 }
 0x606   :  { %10 = sbr.rel (!%p8_p5) target bundleno = 2 (0x2), region = 54 }

// kernel: vit_forward.17
= control target key start
LH: loop header
LB: loop body
LE: loop exit
PB: predicated region body
PF: predicated region fallthrough
CT: control target
= control target key end

     0   :  { %vm22_vm0 = vcmask 261120   ;;  %v237_v0 = vmov 0.0   ;;  %vm238_vm1 = vmmov 0   ;;  %vm24_vm2 = vcmask 254976   ;;  %s308_s1 = inlined_call_operand.vmem [shape: bf16[128,32], index: 1, kind: input, shape index: {}]   ;;  %s309_s0 = inlined_call_operand.vmem [shape: bf16[10,128], index: 0, kind: input, shape index: {}]   ;;  %s310_s3 = inlined_call_operand.vmem [shape: bf16[10,32], index: 3, kind: input, shape index: {}]   ;;  %s311_s2 = inlined_call_operand.vmem [shape: f32[1,32], index: 2, kind: input, shape index: {}]   ;;  %s312_s4 = inlined_call_operand.vmem [shape: bf16[10,32], index: 4, kind: output, shape index: {}]  }
   0x1   :  { %206 = vmatprep.subr.bf16.mxu0 %v237_v0  ;;  %v228_v1 = vld [vmem:[%s308_s1] sm:$0xff]   ;;  %222 = vmatprep.mubr.msk.bf16.mxu0 %vm238_vm1, %v237_v0  ;;  %23 = vst.msk [vmem:[#allocation2] sm:$0xff] %vm22_vm0, %v237_v0  ;;  %v229_v2 = vld [vmem:[%s308_s1 + $0x8] sm:$0xff]   ;;  %v230_v3 = vld [vmem:[%s308_s1 + $0x10] sm:$0xff]   ;;  %vm175_vm3 = vcmask 257024   ;;  %vm177_vm4 = vcmask 253952  }
   0x2   :  { %207 = vmatpush3.bf16.msra.mxu0 %v228_v1  ;;  %v231_v4 = vld [vmem:[%s308_s1 + $0x18] sm:$0xff]   ;;  %v232_v5 = vld [vmem:[%s308_s1 + $0x20] sm:$0xff]   ;;  %v233_v6 = vld [vmem:[%s308_s1 + $0x28] sm:$0xff]   ;;  %25 = vst.msk [vmem:[#allocation2 + $0x8] sm:$0x3] %vm24_vm2, %v237_v0 }
   0x3   :  { %208 = vmatprep.subr.bf16.mxu0 %v237_v0  ;;  %v234_v7 = vld [vmem:[%s308_s1 + $0x30] sm:$0xff]   ;;  %v235_v8 = vld [vmem:[%s308_s1 + $0x38] sm:$0xff]   ;;  %v236_v9 = vld [vmem:[%s309_s0] sm:$0x1f]  }
   0x4   :  { %v161_v18 = vld [vmem:[%s310_s3] sm:$0xf]  ;;  %v162_v20 = vld [vmem:[%s310_s3 + $0x4] sm:$0x1] }
   0x5   :  { %v192_v19 = vld [vmem:[%s311_s2] ss:$0 sm:$0xff]  ;;  %v163_v21 = vunpack.c.l.bf16 %v161_v18  ;;  %v164_v24 = vunpack.c.l.bf16 %v162_v20 }
   0x6   :  { %209 = vmatpush3.bf16.msra.mxu0 %v229_v2 }
   0x7   :  { %210 = vmatprep.subr.bf16.mxu0 %v237_v0 }
   0x8   :  { %v28_v10 = vld [vmem:[#allocation2] sm:$0xff] }
   0x9   :  { %v29_v12 = vld [vmem:[#allocation2 + $0x8] sm:$0x3] }
   0xa   :  { %211 = vmatpush3.bf16.msra.mxu0 %v230_v3 }
   0xb   :  { %212 = vmatprep.subr.bf16.mxu0 %v237_v0 }
   0xe   :  { %213 = vmatpush3.bf16.msra.mxu0 %v231_v4 }
   0xf   :  { %214 = vmatprep.subr.bf16.mxu0 %v237_v0 }
  0x12   :  { %215 = vmatpush3.bf16.msra.mxu0 %v232_v5 }
  0x13   :  { %216 = vmatprep.subr.bf16.mxu0 %v237_v0 }
  0x16   :  { %217 = vmatpush3.bf16.msra.mxu0 %v233_v6 }
  0x17   :  { %218 = vmatprep.subr.bf16.mxu0 %v237_v0 }
  0x1a   :  { %219 = vmatpush3.bf16.msra.mxu0 %v234_v7 }
  0x1b   :  { %220 = vmatprep.subr.bf16.mxu0 %v237_v0 }
  0x1e   :  { %221 = vmatpush3.bf16.msra.mxu0 %v235_v8 }
  0x21   :  { %223 = vmatmul.mubr.bf16.vlgmr.msra.gmra.mrb[0].mxu0 %v236_v9 }
  0xf4   :  { %v134_v11 = vpop.f32.mrb[0].mxu0 }
  0xf5   :  { %v141_v13 = vadd.f32 %v134_v11, %v28_v10  ;;  %v224_v14 = vpop.f32.mrb[1].mxu0 }
  0xf6   :  { %v137_v15 = vpop.f32.mrb[2].mxu0 }
  0xf7   :  { %144 = vst.msk [vmem:[#allocation2] sm:$0xff] %vm22_vm0, %v141_v13  ;;  %v142_v16 = vadd.f32 %v137_v15, %v29_v12  ;;  %v225_v17 = vpop.f32.mrb[3].mxu0 }
  0xf9   :  { %146 = vst.msk [vmem:[#allocation2 + $0x8] sm:$0x3] %vm24_vm2, %v142_v16 }
  0xfe   :  { %v150_v22 = vld [vmem:[#allocation2] sm:$0xff] }
  0xff   :  { %v159_v23 = vadd.f32 %v192_v19, %v150_v22 }
 0x100   :  { %v151_v25 = vld [vmem:[#allocation2 + $0x8] sm:$0x3] }
 0x101   :  { %v165_v26 = vadd.f32 %v163_v21, %v159_v23  ;;  %v160_v27 = vadd.f32 %v192_v19, %v151_v25 }
 0x103   :  { %v195_v28 = vpack.c.bf16 %v165_v26, %v165_v26  ;;  %v166_v29 = vadd.f32 %v164_v24, %v160_v27 }
 0x105   :  { %176 = vst.msk [vmem:[%s312_s4] sm:$0xf] %vm175_vm3, %v195_v28  ;;  %v196_v30 = vpack.c.bf16 %v166_v29, %v166_v29 }
 0x107   :  { %178 = vst.msk [vmem:[%s312_s4 + $0x4] sm:$0x1] %vm177_vm4, %v196_v30 }

// kernel: vit_forward.16
= control target key start
LH: loop header
LB: loop body
LE: loop exit
PB: predicated region body
PF: predicated region fallthrough
CT: control target
= control target key end

     0   :  { %vm35_vm0 = vcmask 261120   ;;  %vm39_vm1 = vcmask 254976   ;;  %v258_v11 = vmov 0.0   ;;  %vm259_vm2 = vmmov 0   ;;  %s320_s0 = inlined_call_operand.vmem [shape: bf16[10,32], index: 0, kind: input, shape index: {}]   ;;  %s321_s1 = inlined_call_operand.vmem [shape: bf16[32,128], index: 1, kind: input, shape index: {}]   ;;  %s322_s3 = inlined_call_operand.vmem [shape: f32[1,32], index: 3, kind: input, shape index: {}]   ;;  %s323_s4 = inlined_call_operand.vmem [shape: f32[1,32], index: 4, kind: input, shape index: {}]   ;;  %s324_s2 = inlined_call_operand.vmem [shape: f32[1,128], index: 2, kind: input, shape index: {}]   ;;  %s325_s5 = inlined_call_operand.vmem [shape: bf16[10,128], index: 5, kind: output, shape index: {}]  }
   0x1   :  { %v31_v0 = vld [vmem:[%s320_s0] sm:$0xf]  ;;  %v32_v1 = vld [vmem:[%s320_s0 + $0x4] sm:$0x1]  ;;  %237 = vmatprep.subr.bf16.mxu0 %v258_v11  ;;  %26 = vst [vmem:[#allocation2 + $0x8] sm:$0x3] %v258_v11  ;;  %241 = vmatprep.mubr.msk.bf16.mxu0 %vm259_vm2, %v258_v11 }
   0x2   :  { %v33_v2 = vunpack.c.l.bf16 %v31_v0  ;;  %v34_v3 = vunpack.c.l.bf16 %v32_v1  ;;  %v247_v10 = vld [vmem:[%s321_s1] sm:$0xff]   ;;  %v248_v12 = vld [vmem:[%s321_s1 + $0x8] sm:$0xff]   ;;  %vm95_vm3 = vcmask 257024   ;;  %vm97_vm4 = vcmask 253952  }
   0x3   :  { %238 = vmatpush3.bf16.msra.mxu0 %v247_v10  ;;  %v219_v31 = vld [vmem:[%s322_s3] ss:$0 sm:$0xff] }
   0x4   :  { %v36_v4 = vsel %vm35_vm0, %v33_v2, 0.0  ;;  %v45_v5 = vmul.f32 %v33_v2, %v33_v2  ;;  %v46_v6 = vmul.f32 %v34_v3, %v34_v3  ;;  %v40_v8 = vsel %vm39_vm1, %v34_v3, 0.0  ;;  %239 = vmatprep.subr.bf16.mxu0 %v258_v11  ;;  %v220_v33 = vld [vmem:[%s323_s4] ss:$0 sm:$0xff] }
   0x5   :  { %37 = vadd.xlane.f32.xlu0 %v36_v4  ;;  %v227_v45 = vld [vmem:[%s324_s2] ss:$0 sm:$0xff] }
   0x6   :  { %v47_v7 = vsel %vm35_vm0, %v45_v5, 0.0  ;;  %v50_v9 = vsel %vm39_vm1, %v46_v6, 0.0 }
   0x7   :  { %48 = vadd.xlane.f32.xlu1 %v47_v7  ;;  %240 = vmatpush3.bf16.msra.mxu0 %v248_v12 }
   0x8   :  { %v102_v46 = vld [vmem:[#allocation2 + $0x8] sm:$0x3] }
   0x9   :  { %41 = vadd.xlane.f32.xlu0 %v40_v8 }
   0xb   :  { %51 = vadd.xlane.f32.xlu1 %v50_v9 }
  0x92   :  { %v38_v13 = vpop.xlane.xlu0 %37 }
  0x93   :  { %v43_v14 = vmul.f32 0.03125, %v38_v13 }
  0x94   :  { %v49_v15 = vpop.xlane.xlu1 %48 }
  0x95   :  { %v55_v16 = vmul.f32 %v43_v14, %v43_v14  ;;  %v53_v17 = vmul.f32 0.03125, %v49_v15  ;;  %v61_v29 = vsub.f32 %v33_v2, %v43_v14 }
  0x96   :  { %v42_v18 = vpop.xlane.xlu0 %41 }
  0x97   :  { %v57_v19 = vsub.f32 %v53_v17, %v55_v16  ;;  %v44_v20 = vmul.f32 0.03125, %v42_v18 }
  0x98   :  { %v52_v21 = vpop.xlane.xlu1 %51 }
  0x99   :  { %v59_v22 = vmax.f32 %v57_v19, 0.0  ;;  %v56_v23 = vmul.f32 %v44_v20, %v44_v20  ;;  %v54_v24 = vmul.f32 0.03125, %v52_v21  ;;  %v62_v35 = vsub.f32 %v34_v3, %v44_v20 }
  0x9b   :  { %v63_v25 = vadd.f32 1e-06, %v59_v22  ;;  %v58_v26 = vsub.f32 %v54_v24, %v56_v23 }
  0x9d   :  { %250 = vrsqrt.f32 %v63_v25  ;;  %v60_v27 = vmax.f32 %v58_v26, 0.0 }
  0x9f   :  { %v64_v28 = vadd.f32 1e-06, %v60_v27 }
  0xa1   :  { %252 = vrsqrt.f32 %v64_v28 }
  0xa7   :  { %v251_v30 = vpop.eup %250 }
  0xa8   :  { %v67_v32 = vmul.f32 %v251_v30, %v61_v29 }
  0xaa   :  { %v76_v34 = vmul.f32 %v219_v31, %v67_v32 }
  0xab   :  { %v253_v36 = vpop.eup %252 }
  0xac   :  { %v85_v37 = vadd.f32 %v220_v33, %v76_v34  ;;  %v68_v38 = vmul.f32 %v253_v36, %v62_v35 }
  0xae   :  { %v230_v39 = vpack.c.bf16 %v85_v37, %v85_v37  ;;  %v77_v40 = vmul.f32 %v219_v31, %v68_v38 }
  0xb0   :  { %96 = vst.msk [vmem:[#allocation3] sm:$0xf] %vm95_vm3, %v230_v39  ;;  %v86_v41 = vadd.f32 %v220_v33, %v77_v40 }
  0xb2   :  { %v231_v42 = vpack.c.bf16 %v86_v41, %v86_v41 }
  0xb4   :  { %98 = vst.msk [vmem:[#allocation3 + $0x4] sm:$0x1] %vm97_vm4, %v231_v42 }
  0xbb   :  { %v249_v43 = vld [vmem:[#allocation3] sm:$0x1f]  }
  0xbc   :  { %242 = vmatmul.mubr.msk.bf16.vlgmr.msra.gmra.mrb[0].mxu0 %vm35_vm0, %v249_v43 }
 0x18f   :  { %v162_v44 = vpop.f32.mrb[0].mxu0 }
 0x190   :  { %v243_v47 = vpop.f32.mrb[1].mxu0  ;;  %v185_v49 = vadd.f32 %v227_v45, %v162_v44 }
 0x191   :  { %v165_v48 = vpop.f32.mrb[2].mxu0 }
 0x192   :  { %v170_v50 = vadd.f32 %v165_v48, %v102_v46  ;;  %v244_v51 = vpop.f32.mrb[3].mxu0  ;;  %v189_v52 = vmul.f32 0.044715, %v185_v49  ;;  %v187_v1 = vmul.f32 0.5, %v185_v49 }
 0x194   :  { %172 = vst [vmem:[#allocation2 + $0x8] sm:$0x3] %v170_v50  ;;  %v191_v53 = vmul.f32 %v189_v52, %v185_v49 }
 0x196   :  { %v193_v54 = vmul.f32 %v191_v53, %v185_v49 }
 0x198   :  { %v195_v55 = vadd.f32 %v193_v54, %v185_v49 }
 0x19a   :  { %v197_v57 = vmul.f32 0.7978846, %v195_v55 }
 0x19b   :  { %v177_v56 = vld [vmem:[#allocation2 + $0x8] sm:$0x3] }
 0x19c   :  { %v186_v58 = vadd.f32 %v227_v45, %v177_v56  ;;  %254 = vtanh.f32 %v197_v57 }
 0x19e   :  { %v190_v59 = vmul.f32 0.044715, %v186_v58  ;;  %v188_v6 = vmul.f32 0.5, %v186_v58 }
 0x1a0   :  { %v192_v60 = vmul.f32 %v190_v59, %v186_v58 }
 0x1a2   :  { %v194_v61 = vmul.f32 %v192_v60, %v186_v58 }
 0x1a4   :  { %v196_v62 = vadd.f32 %v194_v61, %v186_v58 }
 0x1a6   :  { %v198_v63 = vmul.f32 0.7978846, %v196_v62  ;;  %v255_v0 = vpop.eup %254 }
 0x1a7   :  { %v201_v2 = vadd.f32 1.0, %v255_v0 }
 0x1a8   :  { %256 = vtanh.f32 %v198_v63 }
 0x1a9   :  { %v203_v3 = vmul.f32 %v201_v2, %v187_v1 }
 0x1ab   :  { %v232_v4 = vpack.c.bf16 %v203_v3, %v203_v3 }
 0x1ad   :  { %213 = vst [vmem:[%s325_s5] sm:$0xf] %v232_v4 }
 0x1b2   :  { %v257_v5 = vpop.eup %256 }
 0x1b3   :  { %v202_v7 = vadd.f32 1.0, %v257_v5 }
 0x1b5   :  { %v204_v8 = vmul.f32 %v202_v7, %v188_v6 }
 0x1b7   :  { %v233_v9 = vpack.c.bf16 %v204_v8, %v204_v8 }
 0x1b9   :  { %214 = vst [vmem:[%s325_s5 + $0x4] sm:$0x1] %v233_v9 }

// kernel: vit_forward.23
= control target key start
LH: loop header
LB: loop body
LE: loop exit
PB: predicated region body
PF: predicated region fallthrough
CT: control target
= control target key end

     0   :  { %vm34_vm0 = vcmask 254976   ;;  %s276_s0 = inlined_call_operand.vmem [shape: bf16[2,32], index: 0, kind: input, shape index: {}]   ;;  %s277_s1 = inlined_call_operand.vmem [shape: bf16[32,10], index: 1, kind: input, shape index: {}]   ;;  %s278_s2 = inlined_call_operand.vmem [shape: f32[1,10], index: 2, kind: input, shape index: {}]   ;;  %s279_s3 = inlined_call_operand.vmem [shape: f32[1,32], index: 3, kind: input, shape index: {}]   ;;  %s280_s4 = inlined_call_operand.vmem [shape: f32[1,32], index: 4, kind: input, shape index: {}]   ;;  %s281_s5 = inlined_call_operand.hbm [shape: f32[2,10], index: 5, kind: output, shape index: {}]  }
   0x1   :  { %v32_v0 = vld [vmem:[%s276_s0] sm:$0x1] }
   0x2   :  { %v33_v1 = vunpack.c.l.bf16 %v32_v0 }
   0x3   :  { %10 = vsyncpa [#allocation5], 0  ;;  %v182_v5 = vld [vmem:[%s277_s1] sm:$0xff]   ;;  %v210_v6 = vmov 0.0   ;;  %v183_v7 = vld [vmem:[%s277_s1 + $0x8] sm:$0xff]   ;;  %vm211_vm1 = vmmov 0  }
   0x4   :  { %v35_v2 = vsel %vm34_vm0, %v33_v1, 0.0  ;;  %v39_v3 = vmul.f32 %v33_v1, %v33_v1  ;;  %171 = vmatprep.subr.bf16.mxu0 %v210_v6  ;;  %175 = vmatprep.mubr.msk.bf16.mxu0 %vm211_vm1, %v210_v6  ;;  %vm26_vm2 = vcmask 74752   ;;  %v162_v18 = vld [vmem:[%s279_s3] ss:$0 sm:$0xff]  ;;  %vm68_vm3 = vcmask 253952  }
   0x5   :  { %36 = vadd.xlane.f32.xlu0 %v35_v2  ;;  %172 = vmatpush3.bf16.msra.mxu0 %v182_v5  ;;  %27 = vst.msk [vmem:[#allocation2] sm:$0x3] %vm26_vm2, %v210_v6  ;;  %v163_v20 = vld [vmem:[%s280_s4] ss:$0 sm:$0xff]  ;;  %vm88_vm4 = vcmask 261120   ;;  %s212_s4 = smov [#allocation4]  }
   0x6   :  { %v40_v4 = vsel %vm34_vm0, %v39_v3, 0.0  ;;  %173 = vmatprep.subr.bf16.mxu0 %v210_v6  ;;  %v167_v31 = vld [vmem:[%s278_s2] ss:$0 sm:$0xff]  ;;  %s154_s27 = sshll.u32 %s212_s4, 4  ;;  %s155_s27 = int_to_ptr.vmem [resolvable:$true] %s154_s27 }
   0x7   :  { %s186_s28 = scalar_lea.vmem %s155_s27, 32  ;;  %p191_p1 = scmp.lt.s32.totalorder %s155_s27, %s155_s27 }
   0x8   :  { %p187_p0 = scmp.ne.s32.totalorder %s155_s27, %s186_s28  ;;  %p192_p2 = scmp.lt.s32.totalorder %s186_s28, %s186_s28 }
   0x9   :  { %41 = vadd.xlane.f32.xlu0 %v40_v4  ;;  %174 = vmatpush3.bf16.msra.mxu0 %v183_v7 }
   0xa   :  { %p193_p3 = por %p192_p2, %p191_p1 }
   0xc   :  { %v71_v25 = vld [vmem:[#allocation2] sm:$0x3]  ;;  %p194_p4 = pnand %p193_p3, %p187_p0 }
  0x92   :  { %v37_v8 = vpop.xlane.xlu0 %36 }
  0x93   :  { %v38_v9 = vmul.f32 0.03125, %v37_v8 }
  0x95   :  { %v44_v11 = vmul.f32 %v38_v9, %v38_v9  ;;  %v47_v16 = vsub.f32 %v33_v1, %v38_v9 }
  0x96   :  { %v42_v10 = vpop.xlane.xlu0 %41 }
  0x97   :  { %v43_v12 = vmul.f32 0.03125, %v42_v10 }
  0x99   :  { %v45_v13 = vsub.f32 %v43_v12, %v44_v11 }
  0x9b   :  { %v46_v14 = vmax.f32 %v45_v13, 0.0 }
  0x9d   :  { %v48_v15 = vadd.f32 1e-06, %v46_v14 }
  0x9f   :  { %184 = vrsqrt.f32 %v48_v15 }
  0xa9   :  { %v185_v17 = vpop.eup %184 }
  0xaa   :  { %v50_v19 = vmul.f32 %v185_v17, %v47_v16 }
  0xac   :  { %v58_v21 = vmul.f32 %v162_v18, %v50_v19 }
  0xae   :  { %v66_v22 = vadd.f32 %v163_v20, %v58_v21 }
  0xb0   :  { %v67_v23 = vpack.c.bf16 %v66_v22, %v66_v22 }
  0xb2   :  { %69 = vst.msk [vmem:[#allocation3] sm:$0x1] %vm68_vm3, %v67_v23 }
  0xb9   :  { %v70_v24 = vld [vmem:[#allocation3] sm:$0x1] }
  0xba   :  { %176 = vmatmul.mubr.msk.bf16.vlgmr.msra.gmra.mrb[0].mxu0 %vm88_vm4, %v70_v24 }
 0x18d   :  { %v126_v26 = vpop.f32.mrb[0].mxu0 }
 0x18e   :  { %v132_v27 = vadd.f32 %v126_v26, %v71_v25  ;;  %v177_v28 = vpop.f32.mrb[1].mxu0 }
 0x18f   :  { %v129_v29 = vpop.f32.mrb[2].mxu0 }
 0x190   :  { %134 = vst.msk [vmem:[#allocation2] sm:$0x3] %vm26_vm2, %v132_v27  ;;  %v178_v30 = vpop.f32.mrb[3].mxu0 }
 0x197   :  { %v138_v32 = vld [vmem:[#allocation2] sm:$0x3] }
 0x198   :  { %v146_v33 = vadd.f32 %v167_v31, %v138_v32 }
 0x19a   :  { %147 = vst.msk [vmem:[#allocation4] sm:$0x3] %vm26_vm2, %v146_v33 }
 0x19b   :  { %197 = shalt.err (!%p194_p4)
}
 0x19c   :  { %s198_s6 = scalar_lea.hbm %s281_s5, 32 }
 0x19d   :  { %p199_p5 = scmp.ne.s32.totalorder %s281_s5, %s198_s6  ;;  %p202_p6 = scmp.lt.u32.totalorder %s198_s6, %s281_s5 }
 0x19f   :  { %p204_p7 = pnand %p202_p6, %p199_p5 }
 0x1a1   :  { %207 = shalt.err (!%p204_p7)
}
 0x1a2   :  { %157 = dma.vmem_to_hbm [thread:$0]  %s155_s27, 32, %s281_s5, [#allocation5]  }
 0x1a3   :  { %208 = dma.done.wait [#allocation5], 32  }
 0x1a4   :  { %209 = vsyncadd [#allocation5], 4294967264 }
 0x1a5   :  { %161 = vsyncpa [#allocation5], 1 }

</bundles_post_ra>
